<compile_context>
chip_gen: v5e
topology: v5e:2x2
jax: 0.10.0
libtpu: 0.0.40
codegen_flags: <defaults>
</compile_context>

<pallas_src>
import jax
import jax.numpy as jnp
from jax import lax
from jax.experimental import pallas as pl
from jax.experimental.pallas import tpu as pltpu


def ngram_kernel(idx_ref, emb_ref, w1_ref, b1_ref, w2_ref, b2_ref, out_ref):
    # idx_ref: (bt, C) int32; emb_ref: (V, E); w1_ref: (C*E, H); w2_ref: (H, V); out_ref: (bt, V)
    bt, C = idx_ref.shape
    V, E = emb_ref.shape
    H = w1_ref.shape[1]

    idx = idx_ref[...]                                             # (bt, C) int32
    emb = emb_ref[...]                                             # (V, E) f32, VMEM-resident
    lane_ids = lax.broadcasted_iota(jnp.int32, (bt, V), 1)         # token-id grid along lanes

    # embed + lin1, accumulated per context position (no lane-concatenate on the critical path).
    h = jnp.zeros((bt, H), jnp.float32)
    for c in range(C):                                             # C is tiny & static -> unrolled
        onehot = jnp.where(idx[:, c:c + 1] == lane_ids, 1.0, 0.0).astype(jnp.float32)  # (bt, V)
        rows = jnp.dot(onehot, emb, preferred_element_type=jnp.float32)                # (bt, E)
        h = h + jnp.dot(rows, w1_ref[c * E:(c + 1) * E, :],
                        preferred_element_type=jnp.float32)                            # (bt, H)
    h = jnp.maximum(h + b1_ref[...], 0.0)                          # ReLU(lin1(x))

    # lin2: (bt, H) @ (H, V), lane-dense output (V multiple of 128).
    out = jnp.dot(h, w2_ref[...], preferred_element_type=jnp.float32) + b2_ref[...]
    out_ref[...] = out.astype(out_ref.dtype)


def _round_up(x, m):
    return (x + m - 1) // m * m


def ngram_forward(indices, emb, w1_flat, b1, w2, b2, *, block_b=128):
    """indices: (C,) or (B, C) int32; emb: (V, E); w1_flat: (C*E, H); b1: (1, H); w2: (H, V); b2: (1, V).

    Returns (1, V) for a (C,) input (PyTorch forward semantics) or (B, V) for a batched input.
    """
    squeeze = indices.ndim == 1
    idx = indices.reshape(1, -1) if squeeze else indices
    idx = idx.astype(jnp.int32)
    B, C = idx.shape
    V = w2.shape[1]

    bt = min(block_b, _round_up(B, 8))        # >= 8 rows -> sublane-dense output tiles
    Bp = _round_up(B, bt)
    if Bp != B:
        idx = jnp.pad(idx, ((0, Bp - B), (0, 0)))  # pad with token 0 (rows sliced off below)

    out = pl.pallas_call(
        ngram_kernel,
        out_shape=jax.ShapeDtypeStruct((Bp, V), jnp.float32),
        grid=(Bp // bt,),
        in_specs=[
            pl.BlockSpec((bt, C), lambda i: (i, 0)),            # per-step index tile
            pl.BlockSpec(emb.shape, lambda i: (0, 0)),          # embedding table (resident)
            pl.BlockSpec(w1_flat.shape, lambda i: (0, 0)),      # lin1 W (C*E, H), resident
            pl.BlockSpec(b1.shape, lambda i: (0, 0)),           # lin1 b, resident
            pl.BlockSpec(w2.shape, lambda i: (0, 0)),           # lin2 W (H, V), resident
            pl.BlockSpec(b2.shape, lambda i: (0, 0)),           # lin2 b, resident
        ],
        out_specs=pl.BlockSpec((bt, V), lambda i: (i, 0)),
        compiler_params=pltpu.CompilerParams(
            dimension_semantics=("parallel",)),                 # batch axis shards across TCs
    )(idx, emb, w1_flat, b1, w2, b2)

    return out[:B]


def ngram_reference(indices_bc, emb, w1_flat, b1, w2, b2):
    B = indices_bc.shape[0]
    x = emb[indices_bc].reshape(B, -1)              # embed1(x).view((B, -1))
    h = jnp.maximum(x @ w1_flat + b1, 0.0)          # relu(lin1(x))
    return h @ w2 + b2                              # lin2(h)


if __name__ == "__main__":
    vocab_size, embedding_size, context_size, hidden = 256, 32, 4, 128
    batch = 256

    key = jax.random.PRNGKey(0)
    k_emb, k_w1, k_b1, k_w2, k_b2, k_idx = jax.random.split(key, 6)

    # Deterministic synthetic parameters (shapes implied by the module's __init__).
    emb = jax.random.normal(k_emb, (vocab_size, embedding_size), jnp.float32)
    w1_flat = jax.random.normal(
        k_w1, (context_size * embedding_size, hidden), jnp.float32) * 0.05
    b1 = jax.random.normal(k_b1, (1, hidden), jnp.float32) * 0.05
    w2 = jax.random.normal(k_w2, (hidden, vocab_size), jnp.float32) * 0.05
    b2 = jax.random.normal(k_b2, (1, vocab_size), jnp.float32) * 0.05

    # Batched contexts: (batch, context_size) token ids.
    idx_batch = jax.random.randint(
        k_idx, (batch, context_size), 0, vocab_size, jnp.int32)

    out_b = jax.block_until_ready(ngram_forward(idx_batch, emb, w1_flat, b1, w2, b2))
    ref_b = ngram_reference(idx_batch, emb, w1_flat, b1, w2, b2)
    assert out_b.shape == (batch, vocab_size)
    assert jnp.allclose(out_b, ref_b, atol=1e-3, rtol=1e-3), "batched mismatch vs reference"

    # Single context — exact PyTorch forward signature: (context_size,) -> (1, vocab_size).
    out_1 = jax.block_until_ready(ngram_forward(idx_batch[0], emb, w1_flat, b1, w2, b2))
    assert out_1.shape == (1, vocab_size)
    assert jnp.allclose(out_1, ref_b[:1], atol=1e-3, rtol=1e-3), "single-context mismatch"

    print("KERNEL_OK")
</pallas_src>

<mosaic_0001>
module attributes {stable_mosaic.version = 11 : i64} {
  func.func @ngram_kernel(%arg0: i32, %arg1: memref<128x4xi32, #tpu.memory_space<vmem>>, %arg2: memref<256x32xf32, #tpu.memory_space<vmem>>, %arg3: memref<128x128xf32, #tpu.memory_space<vmem>>, %arg4: memref<1x128xf32, #tpu.memory_space<vmem>>, %arg5: memref<128x256xf32, #tpu.memory_space<vmem>>, %arg6: memref<1x256xf32, #tpu.memory_space<vmem>>, %arg7: memref<128x256xf32, #tpu.memory_space<vmem>>) attributes {dimension_semantics = [#tpu.dimension_semantics<parallel>], iteration_bounds = array<i64: 2>, scalar_prefetch = 0 : i64, scratch_operands = 0 : i64, tpu.core_type = #tpu.core_type<tc>, window_params = [{transform_indices = @transform_0, window_bounds = array<i64: 128, 4>}, {pipeline_mode = #tpu.pipeline_mode<synchronous>, transform_indices = @transform_1, window_bounds = array<i64: 256, 32>}, {pipeline_mode = #tpu.pipeline_mode<synchronous>, transform_indices = @transform_2, window_bounds = array<i64: 128, 128>}, {pipeline_mode = #tpu.pipeline_mode<synchronous>, transform_indices = @transform_3, window_bounds = array<i64: 1, 128>}, {pipeline_mode = #tpu.pipeline_mode<synchronous>, transform_indices = @transform_4, window_bounds = array<i64: 128, 256>}, {pipeline_mode = #tpu.pipeline_mode<synchronous>, transform_indices = @transform_5, window_bounds = array<i64: 1, 256>}, {transform_indices = @transform_6, window_bounds = array<i64: 128, 256>}]} {
    %c0 = arith.constant 0 : index
    %c0_0 = arith.constant 0 : index
    %0 = vector.load %arg1[%c0, %c0_0] : memref<128x4xi32, #tpu.memory_space<vmem>>, vector<128x4xi32>
    %c0_1 = arith.constant 0 : index
    %c0_2 = arith.constant 0 : index
    %1 = vector.load %arg2[%c0_1, %c0_2] : memref<256x32xf32, #tpu.memory_space<vmem>>, vector<256x32xf32>
    %2 = tpu.iota {dimensions = array<i32: 1>} : vector<128x256xi32>
    %cst = arith.constant 0.000000e+00 : f32
    %3 = vector.broadcast %cst : f32 to vector<128x128xf32>
    %4 = vector.extract_strided_slice %0 {offsets = [0, 0], sizes = [128, 1], strides = [1, 1]} : vector<128x4xi32> to vector<128x1xi32>
    %5 = vector.broadcast %4 : vector<128x1xi32> to vector<128x256xi32>
    %6 = arith.cmpi eq, %5, %2 : vector<128x256xi32>
    %cst_3 = arith.constant 1.000000e+00 : f32
    %cst_4 = arith.constant 0.000000e+00 : f32
    %7 = vector.broadcast %cst_3 : f32 to vector<128x256xf32>
    %8 = vector.broadcast %cst_4 : f32 to vector<128x256xf32>
    %9 = arith.select %6, %7, %8 : vector<128x256xi1>, vector<128x256xf32>
    %cst_5 = arith.constant dense<0.000000e+00> : vector<128x32xf32>
    %10 = tpu.matmul %9, %1, %cst_5 {dimension_numbers = #tpu.dot_dimension_numbers<[1], [0], [0], [1], [0, 0, 1, 1], [], []>} : vector<128x256xf32>, vector<256x32xf32>, vector<128x32xf32> -> vector<128x32xf32>
    %c0_6 = arith.constant 0 : index
    %c0_7 = arith.constant 0 : index
    %11 = vector.load %arg3[%c0_6, %c0_7] : memref<128x128xf32, #tpu.memory_space<vmem>>, vector<32x128xf32>
    %cst_8 = arith.constant dense<0.000000e+00> : vector<128x128xf32>
    %12 = tpu.matmul %10, %11, %cst_8 {dimension_numbers = #tpu.dot_dimension_numbers<[1], [0], [0], [1], [0, 0, 1, 1], [], []>} : vector<128x32xf32>, vector<32x128xf32>, vector<128x128xf32> -> vector<128x128xf32>
    %13 = arith.addf %3, %12 : vector<128x128xf32>
    %14 = vector.extract_strided_slice %0 {offsets = [0, 1], sizes = [128, 1], strides = [1, 1]} : vector<128x4xi32> to vector<128x1xi32>
    %15 = vector.broadcast %14 : vector<128x1xi32> to vector<128x256xi32>
    %16 = arith.cmpi eq, %15, %2 : vector<128x256xi32>
    %cst_9 = arith.constant 1.000000e+00 : f32
    %cst_10 = arith.constant 0.000000e+00 : f32
    %17 = vector.broadcast %cst_9 : f32 to vector<128x256xf32>
    %18 = vector.broadcast %cst_10 : f32 to vector<128x256xf32>
    %19 = arith.select %16, %17, %18 : vector<128x256xi1>, vector<128x256xf32>
    %cst_11 = arith.constant dense<0.000000e+00> : vector<128x32xf32>
    %20 = tpu.matmul %19, %1, %cst_11 {dimension_numbers = #tpu.dot_dimension_numbers<[1], [0], [0], [1], [0, 0, 1, 1], [], []>} : vector<128x256xf32>, vector<256x32xf32>, vector<128x32xf32> -> vector<128x32xf32>
    %c32 = arith.constant 32 : index
    %c0_12 = arith.constant 0 : index
    %21 = vector.load %arg3[%c32, %c0_12] : memref<128x128xf32, #tpu.memory_space<vmem>>, vector<32x128xf32>
    %cst_13 = arith.constant dense<0.000000e+00> : vector<128x128xf32>
    %22 = tpu.matmul %20, %21, %cst_13 {dimension_numbers = #tpu.dot_dimension_numbers<[1], [0], [0], [1], [0, 0, 1, 1], [], []>} : vector<128x32xf32>, vector<32x128xf32>, vector<128x128xf32> -> vector<128x128xf32>
    %23 = arith.addf %13, %22 : vector<128x128xf32>
    %24 = vector.extract_strided_slice %0 {offsets = [0, 2], sizes = [128, 1], strides = [1, 1]} : vector<128x4xi32> to vector<128x1xi32>
    %25 = vector.broadcast %24 : vector<128x1xi32> to vector<128x256xi32>
    %26 = arith.cmpi eq, %25, %2 : vector<128x256xi32>
    %cst_14 = arith.constant 1.000000e+00 : f32
    %cst_15 = arith.constant 0.000000e+00 : f32
    %27 = vector.broadcast %cst_14 : f32 to vector<128x256xf32>
    %28 = vector.broadcast %cst_15 : f32 to vector<128x256xf32>
    %29 = arith.select %26, %27, %28 : vector<128x256xi1>, vector<128x256xf32>
    %cst_16 = arith.constant dense<0.000000e+00> : vector<128x32xf32>
    %30 = tpu.matmul %29, %1, %cst_16 {dimension_numbers = #tpu.dot_dimension_numbers<[1], [0], [0], [1], [0, 0, 1, 1], [], []>} : vector<128x256xf32>, vector<256x32xf32>, vector<128x32xf32> -> vector<128x32xf32>
    %c64 = arith.constant 64 : index
    %c0_17 = arith.constant 0 : index
    %31 = vector.load %arg3[%c64, %c0_17] : memref<128x128xf32, #tpu.memory_space<vmem>>, vector<32x128xf32>
    %cst_18 = arith.constant dense<0.000000e+00> : vector<128x128xf32>
    %32 = tpu.matmul %30, %31, %cst_18 {dimension_numbers = #tpu.dot_dimension_numbers<[1], [0], [0], [1], [0, 0, 1, 1], [], []>} : vector<128x32xf32>, vector<32x128xf32>, vector<128x128xf32> -> vector<128x128xf32>
    %33 = arith.addf %23, %32 : vector<128x128xf32>
    %34 = vector.extract_strided_slice %0 {offsets = [0, 3], sizes = [128, 1], strides = [1, 1]} : vector<128x4xi32> to vector<128x1xi32>
    %35 = vector.broadcast %34 : vector<128x1xi32> to vector<128x256xi32>
    %36 = arith.cmpi eq, %35, %2 : vector<128x256xi32>
    %cst_19 = arith.constant 1.000000e+00 : f32
    %cst_20 = arith.constant 0.000000e+00 : f32
    %37 = vector.broadcast %cst_19 : f32 to vector<128x256xf32>
    %38 = vector.broadcast %cst_20 : f32 to vector<128x256xf32>
    %39 = arith.select %36, %37, %38 : vector<128x256xi1>, vector<128x256xf32>
    %cst_21 = arith.constant dense<0.000000e+00> : vector<128x32xf32>
    %40 = tpu.matmul %39, %1, %cst_21 {dimension_numbers = #tpu.dot_dimension_numbers<[1], [0], [0], [1], [0, 0, 1, 1], [], []>} : vector<128x256xf32>, vector<256x32xf32>, vector<128x32xf32> -> vector<128x32xf32>
    %c96 = arith.constant 96 : index
    %c0_22 = arith.constant 0 : index
    %41 = vector.load %arg3[%c96, %c0_22] : memref<128x128xf32, #tpu.memory_space<vmem>>, vector<32x128xf32>
    %cst_23 = arith.constant dense<0.000000e+00> : vector<128x128xf32>
    %42 = tpu.matmul %40, %41, %cst_23 {dimension_numbers = #tpu.dot_dimension_numbers<[1], [0], [0], [1], [0, 0, 1, 1], [], []>} : vector<128x32xf32>, vector<32x128xf32>, vector<128x128xf32> -> vector<128x128xf32>
    %43 = arith.addf %33, %42 : vector<128x128xf32>
    %c0_24 = arith.constant 0 : index
    %c0_25 = arith.constant 0 : index
    %44 = vector.load %arg4[%c0_24, %c0_25] : memref<1x128xf32, #tpu.memory_space<vmem>>, vector<1x128xf32>
    %45 = vector.broadcast %44 : vector<1x128xf32> to vector<128x128xf32>
    %46 = arith.addf %43, %45 : vector<128x128xf32>
    %cst_26 = arith.constant 0.000000e+00 : f32
    %47 = vector.broadcast %cst_26 : f32 to vector<128x128xf32>
    %48 = arith.maximumf %46, %47 : vector<128x128xf32>
    %c0_27 = arith.constant 0 : index
    %c0_28 = arith.constant 0 : index
    %49 = vector.load %arg5[%c0_27, %c0_28] : memref<128x256xf32, #tpu.memory_space<vmem>>, vector<128x256xf32>
    %cst_29 = arith.constant dense<0.000000e+00> : vector<128x256xf32>
    %50 = tpu.matmul %48, %49, %cst_29 {dimension_numbers = #tpu.dot_dimension_numbers<[1], [0], [0], [1], [0, 0, 1, 1], [], []>} : vector<128x128xf32>, vector<128x256xf32>, vector<128x256xf32> -> vector<128x256xf32>
    %c0_30 = arith.constant 0 : index
    %c0_31 = arith.constant 0 : index
    %51 = vector.load %arg6[%c0_30, %c0_31] : memref<1x256xf32, #tpu.memory_space<vmem>>, vector<1x256xf32>
    %52 = vector.broadcast %51 : vector<1x256xf32> to vector<128x256xf32>
    %53 = arith.addf %50, %52 : vector<128x256xf32>
    %c0_32 = arith.constant 0 : index
    %c0_33 = arith.constant 0 : index
    %54 = vector.load %arg7[%c0_32, %c0_33] : memref<128x256xf32, #tpu.memory_space<vmem>>, vector<128x256xf32>
    tpu.vector_store %arg7[%c0_32, %c0_33], %53 {strides = array<i32>} : memref<128x256xf32, #tpu.memory_space<vmem>>, vector<128x256xf32>,
    return
  }
  func.func @transform_0(%arg0: i32) -> (i32, i32) {
    %c0_i32 = arith.constant 0 : i32
    %c0_i32_0 = arith.constant 0 : i32
    return %arg0, %c0_i32 : i32, i32
  }
  func.func @transform_1(%arg0: i32) -> (i32, i32) {
    %c0_i32 = arith.constant 0 : i32
    %c0_i32_0 = arith.constant 0 : i32
    %c0_i32_1 = arith.constant 0 : i32
    return %c0_i32, %c0_i32_0 : i32, i32
  }
  func.func @transform_2(%arg0: i32) -> (i32, i32) {
    %c0_i32 = arith.constant 0 : i32
    %c0_i32_0 = arith.constant 0 : i32
    %c0_i32_1 = arith.constant 0 : i32
    return %c0_i32, %c0_i32_0 : i32, i32
  }
  func.func @transform_3(%arg0: i32) -> (i32, i32) {
    %c0_i32 = arith.constant 0 : i32
    %c0_i32_0 = arith.constant 0 : i32
    %c0_i32_1 = arith.constant 0 : i32
    return %c0_i32, %c0_i32_0 : i32, i32
  }
  func.func @transform_4(%arg0: i32) -> (i32, i32) {
    %c0_i32 = arith.constant 0 : i32
    %c0_i32_0 = arith.constant 0 : i32
    %c0_i32_1 = arith.constant 0 : i32
    return %c0_i32, %c0_i32_0 : i32, i32
  }
  func.func @transform_5(%arg0: i32) -> (i32, i32) {
    %c0_i32 = arith.constant 0 : i32
    %c0_i32_0 = arith.constant 0 : i32
    %c0_i32_1 = arith.constant 0 : i32
    return %c0_i32, %c0_i32_0 : i32, i32
  }
  func.func @transform_6(%arg0: i32) -> (i32, i32) {
    %c0_i32 = arith.constant 0 : i32
    %c0_i32_0 = arith.constant 0 : i32
    return %arg0, %c0_i32 : i32, i32
  }
}

</mosaic_0001>

<bundles_post_ra>
// kernel: tpu_custom_call.1
= control target key start
LH: loop header
LB: loop body
LE: loop exit
PB: predicated region body
PF: predicated region fallthrough
CT: control target
= control target key end

     0   :  { %11 = vsyncpa [#allocation3], 0  ;;  %s3780_s0 = inlined_call_operand.vmem [shape: s32[256,4], index: 0, kind: input, shape index: {}]   ;;  %s3781_s1 = inlined_call_operand.vmem [shape: f32[256,32], index: 1, kind: input, shape index: {}]   ;;  %s3782_s2 = inlined_call_operand.vmem [shape: f32[128,128], index: 2, kind: input, shape index: {}]   ;;  %s3783_s3 = inlined_call_operand.vmem [shape: f32[1,128], index: 3, kind: input, shape index: {}]   ;;  %s3784_s4 = inlined_call_operand.vmem [shape: f32[128,256], index: 4, kind: input, shape index: {}]   ;;  %s3785_s5 = inlined_call_operand.vmem [shape: f32[1,256], index: 5, kind: input, shape index: {}]   ;;  %s3786_s6 = inlined_call_operand.hbm [shape: f32[256,256], index: 6, kind: output, shape index: {}]  }
   0x1   :  { %13 = vsyncpa [#allocation3 + $0x1], 0  ;;  %s2502_s21 = smov 0   ;;  %s2504_s22 = smov 0  }
   0x2   :  { %s2506_s23 = smov 0   ;;  %s2508_s24 = smov 0  }
   0x3 LB: > { %s2523_s25 = sadd.s32 4294967295, %s2458_s24   ;;  %s2088_s26 = sadd.s32 4294967294, %s2458_s24   ;;  %s2458_s24 = sphi %s2508_s24, %s3792_s24   ;;  %s2454_s23 = sphi %s2506_s23, %s3791_s23   ;;  %s2450_s22 = sphi %s2504_s22, %s3790_s22   ;;  %s2446_s21 = sphi %s2502_s21, %s3789_s21  }
   0x4   : > { %s2527_s27 = sadd.s32 1, %s2458_s24   ;;  %s157_s28 = sadd.s32 1, %s2454_s23 }
   0x5   : > { %s154_s29 = ssub.s32 %s2458_s24, %s2527_s27  ;;  %p167_p0 = scmp.ne.s32.totalorder %s2454_s23, %s2450_s22 }
   0x6   : > { %p155_p1 = scmp.eq.s32.totalorder %s154_s29, 0  ;;  %p168_p2 = scmp.eq.s32.totalorder %s2523_s25, 1 }
   0x7   : > { %p173_p3 = scmp.ne.s32.totalorder %s2450_s22, %s2446_s21  ;;  %p174_p4 = scmp.eq.s32.totalorder %s2088_s26, 1 }
   0x8   : > { %s2538_s30 = scalar_select %p155_p1, %s2454_s23, %s157_s28  }
   0x9   : > { %p2540_p5 = por %p168_p2, %p167_p0  ;;  %p2544_p6 = por %p174_p4, %p173_p3 }
   0xa   : > { %p2091_p7 = scmp.ge.s32.totalorder %s2458_s24, 1  ;;  %p216_p8 = scmp.lt.s32.totalorder %s2458_s24, 3 }
   0xc   : > { %p217_p9 = pnand %p2091_p7, %p216_p8 }
   0xd   : > { %s2093_s9 = sshll.u32 (!%p217_p9), %s2523_s25, 4  ;;  %s243_s14 = sand.u32 (!%p217_p9), 1, %s2450_s22  }
   0xe   : > { %220 = sbr.rel (%p217_p9) target bundleno = 984 (0x3d8), region = 44  ;;  %p247_p10 = scmp.lt.s32.totalorder (!%p217_p9), %s2093_s9, 31 }
   0xf   : > { %s2092_s17 = sshll.u32 (!%p217_p9), %s243_s14, 8  ;;  %s2294_s18 = sshll.u32 (!%p217_p9), %s2523_s25, 8 }
  0x10   : > { %s2022_s26 = scalar_lea.hbm (!%p217_p9), %s3786_s6, %s2294_s18  ;;  %s2010_s25 = scalar_lea.sflag (!%p217_p9), [#allocation3], %s243_s14 }
  0x11   : > { %s2025_s29 = sshll.u32 (!%p217_p9), %s2022_s26, 4  ;;  %s2416_s15 = scalar_lea.hbm (!%p217_p9), %s3786_s6, 512  ;;  %s2026_s29 = int_to_ptr.hbm [resolvable:$true] %s2025_s29 }
  0x13   : > { %v2460_v0 = vmov 0   ;;  %s3794_s9 = smov (!%p247_p10, %s2093_s9), 31  ;;  %v2461_v10 = vmov 1   ;;  %v2618_v14 = vld [vmem:[%s3781_s1 + $0x78] sm:$0xff]  ;;  %v2628_v16 = vld [vmem:[%s3781_s1 + $0x70] sm:$0xff]  ;;  %v2641_v18 = vld [vmem:[%s3781_s1 + $0x68] sm:$0xff]  ;;  %v301_v50 = vlaneseq }
  0x14   : > { %2374 = vset.pattern.permute.xlu1 %v2460_v0  ;;  %2373 = vset.pattern.permute.xlu0 %v2460_v0  ;;  %s2094_s10 = sshll.u32 %s3794_s9, 3  ;;  %v2623_v15 = vld [vmem:[%s3781_s1 + $0xf8] sm:$0xff]  ;;  %v2635_v17 = vld [vmem:[%s3781_s1 + $0xf0] sm:$0xff]  ;;  %v2653_v20 = vld [vmem:[%s3781_s1 + $0xe8] sm:$0xff]  ;;  %v2462_v56 = vmov 1.0   ;;  %v2463_v63 = vmov 2  }
  0x15   : > { %2375 = vset.pattern.permute.xlu2 %v2460_v0  ;;  %s2557_s13 = scalar_lea.vmem %s3780_s0, %s2094_s10  ;;  %2295 = vmatpush.msra.mxu2 %v2618_v14  ;;  %v2658_v21 = vld [vmem:[%s3781_s1 + $0x60] sm:$0xff]  ;;  %v2675_v23 = vld [vmem:[%s3781_s1 + $0x58] sm:$0xff]  ;;  %v2689_v25 = vld [vmem:[%s3781_s1 + $0x50] sm:$0xff]  ;;  %v2899_v51 = vand.u32 127, %v301_v50  ;;  %s2410_s9 = sshra.s32 %s2026_s29, 4  ;;  %s2411_s9 = int_to_ptr.hbm [resolvable:$true] %s2410_s9 }
  0x16   : > { %v2560_v1 = vld [vmem:[%s2557_s13 + $0x50] sm:$0xff]  ;;  %v2563_v2 = vld [vmem:[%s2557_s13 + $0x40] sm:$0xff]  ;;  %v2572_v4 = vld [vmem:[%s2557_s13 + $0x58] sm:$0xff]  ;;  %2311 = vmatpush.msra.mxu3 %v2623_v15  ;;  %416 = vmatpush.msra.mxu0 %v2618_v14  ;;  %s2412_s10 = scalar_lea.hbm %s2411_s9, 256  ;;  %p2417_p0 = scmp.lt.s32.totalorder %s2411_s9, %s3786_s6 }
  0x17   : > { %335 = vperm.xlu1 %2374, %v2560_v1   ;;  %329 = vperm.xlu0 %2373, %v2563_v2   ;;  %v2568_v3 = vld [vmem:[%s2557_s13 + $0x60] sm:$0xff]  ;;  %v2575_v5 = vld [vmem:[%s2557_s13 + $0x48] sm:$0xff]  ;;  %v2584_v7 = vld [vmem:[%s2557_s13 + $0x78] sm:$0xff]  ;;  %v2906_v52 = vadd.s32 128, %v2899_v51  ;;  %p2413_p11 = scmp.ne.s32.totalorder %s2411_s9, %s2412_s10  ;;  %p2418_p1 = scmp.lt.s32.totalorder %s2416_s15, %s2412_s10 }
  0x18   : > { %341 = vperm.xlu2 %2375, %v2568_v3   ;;  %v2578_v6 = vld [vmem:[%s2557_s13 + $0x68] sm:$0xff]  ;;  %v2587_v8 = vld [vmem:[%s2557_s13 + $0x70] sm:$0xff]  ;;  %v2592_v9 = vld [vmem:[%s2557_s13] sm:$0xff]  ;;  %2296 = vmatpush.msra.mxu2 %v2628_v16 }
  0x19   : > { %v2597_v11 = vld [vmem:[%s2557_s13 + $0x8] sm:$0xff]  ;;  %v2605_v12 = vld [vmem:[%s2557_s13 + $0x10] sm:$0xff]  ;;  %v2612_v13 = vld [vmem:[%s2557_s13 + $0x18] sm:$0xff]  ;;  %481 = vmatpush.msra.mxu1 %v2623_v15  ;;  %2312 = vmatpush.msra.mxu3 %v2635_v17  ;;  %p2414_p12 = pnand %p2413_p11, %p2540_p5  ;;  %p2419_p2 = por %p2418_p1, %p2417_p0 }
  0x1a   : > { %v2645_v19 = vld [vmem:[%s2557_s13 + $0x20] sm:$0xff]  ;;  %417 = vmatpush.msra.mxu0 %v2628_v16  ;;  %2297 = vmatpush.msra.mxu2 %v2641_v18  ;;  %v2680_v24 = vld [vmem:[%s3781_s1 + $0xd8] sm:$0xff]  ;;  %v2695_v26 = vld [vmem:[%s3781_s1 + $0xd0] sm:$0xff] }
  0x1b   : > { %v2668_v22 = vld [vmem:[%s3781_s1 + $0xe0] sm:$0xff]  ;;  %2313 = vmatpush.msra.mxu3 %v2653_v20  ;;  %482 = vmatpush.msra.mxu1 %v2635_v17  ;;  %v2702_v27 = vld [vmem:[%s3781_s1 + $0x48] sm:$0xff]  ;;  %v2734_v32 = vld [vmem:[%s3781_s1 + $0x38] sm:$0xff]  ;;  %p2415_p13 = pneg %p2414_p12 }
  0x1c   : > { %2298 = vmatpush.msra.mxu2 %v2658_v21  ;;  %418 = vmatpush.msra.mxu0 %v2641_v18  ;;  %v2706_v28 = vld [vmem:[%s2557_s13 + $0x28] sm:$0xff]  ;;  %v2719_v30 = vld [vmem:[%s3781_s1 + $0x40] sm:$0xff]  ;;  %v2740_v33 = vld [vmem:[%s3781_s1 + $0xb8] sm:$0xff] }
  0x1d   : > { %2314 = vmatpush.msra.mxu3 %v2668_v22  ;;  %483 = vmatpush.msra.mxu1 %v2653_v20  ;;  %v2712_v29 = vld [vmem:[%s3781_s1 + $0xc8] sm:$0xff]  ;;  %v2727_v31 = vld [vmem:[%s3781_s1 + $0xc0] sm:$0xff]  ;;  %v2748_v34 = vld [vmem:[%s3781_s1 + $0x30] sm:$0xff]  ;;  %p2420_p3 = pnand %p2419_p2, %p2415_p13 }
  0x1e   : > { %2299 = vmatpush.msra.mxu2 %v2675_v23  ;;  %419 = vmatpush.msra.mxu0 %v2658_v21  ;;  %v2751_v35 = vld [vmem:[%s2557_s13 + $0x38] sm:$0xff]  ;;  %v2758_v36 = vld [vmem:[%s3781_s1 + $0xb0] sm:$0xff]  ;;  %v2765_v37 = vld [vmem:[%s3781_s1 + $0x28] sm:$0xff] }
  0x1f   : > { %338 = vperm.xlu1 %2374, %v2572_v4   ;;  %332 = vperm.xlu0 %2373, %v2575_v5   ;;  %v2768_v38 = vld [vmem:[%s2557_s13 + $0x30] sm:$0xff]  ;;  %v2774_v39 = vld [vmem:[%s3781_s1 + $0xa8] sm:$0xff]  ;;  %v2781_v40 = vld [vmem:[%s3781_s1 + $0x20] sm:$0xff]  ;;  %s3682_s13 = scalar_lea.vmem [#allocation2], %s2092_s17 }
  0x20   : > { %344 = vperm.xlu2 %2375, %v2578_v6   ;;  %2315 = vmatpush.msra.mxu3 %v2680_v24  ;;  %v2788_v41 = vld [vmem:[%s3781_s1 + $0xa0] sm:$0xff]  ;;  %v2796_v42 = vld [vmem:[%s3781_s1 + $0x18] sm:$0xff]  ;;  %v2809_v44 = vld [vmem:[%s3781_s1 + $0x10] sm:$0xff]  ;;  %s2023_s28 = sshll.u32 %s3682_s13, 4  ;;  %s2024_s28 = int_to_ptr.vmem [resolvable:$true] %s2023_s28 }
  0x21   : > { %2300 = vmatpush.msra.mxu2 %v2689_v25  ;;  %484 = vmatpush.msra.mxu1 %v2668_v22  ;;  %v2802_v43 = vld [vmem:[%s3781_s1 + $0x98] sm:$0xff]  ;;  %v2817_v45 = vld [vmem:[%s3781_s1 + $0x90] sm:$0xff]  ;;  %v2824_v46 = vld [vmem:[%s3781_s1 + $0x8] sm:$0xff] }
  0x22   : > { %2316 = vmatpush.msra.mxu3 %v2695_v26  ;;  %420 = vmatpush.msra.mxu0 %v2675_v23  ;;  %v2830_v47 = vld [vmem:[%s3781_s1 + $0x88] sm:$0xff]  ;;  %v2862_v48 = vld [vmem:[%s3781_s1] sm:$0xff] }
  0x23   : > { %2301 = vmatpush.msra.mxu2 %v2702_v27  ;;  %485 = vmatpush.msra.mxu1 %v2680_v24  ;;  %v2867_v49 = vld [vmem:[%s3781_s1 + $0x80] sm:$0xff] }
  0x24   : > { %2317 = vmatpush.msra.mxu3 %v2712_v29  ;;  %421 = vmatpush.msra.mxu0 %v2689_v25 }
  0x25   : > { %2302 = vmatpush.msra.mxu2 %v2719_v30  ;;  %486 = vmatpush.msra.mxu1 %v2695_v26 }
  0x26   : > { %2318 = vmatpush.msra.mxu3 %v2727_v31  ;;  %422 = vmatpush.msra.mxu0 %v2702_v27 }
  0x27   : > { %350 = vperm.xlu1 %2374, %v2584_v7   ;;  %347 = vperm.xlu0 %2373, %v2587_v8  }
  0x28   : > { %2376 = vset.pattern.permute.xlu2 %v2461_v10  ;;  %2303 = vmatpush.msra.mxu2 %v2734_v32 }
  0x29   : > { %551 = vperm.xlu2 %2376, %v2592_v9   ;;  %2319 = vmatpush.msra.mxu3 %v2740_v33 }
  0x2a   : > { %2304 = vmatpush.msra.mxu2 %v2748_v34  ;;  %487 = vmatpush.msra.mxu1 %v2712_v29 }
  0x2b   : > { %2320 = vmatpush.msra.mxu3 %v2758_v36  ;;  %423 = vmatpush.msra.mxu0 %v2719_v30 }
  0x2c   : > { %2305 = vmatpush.msra.mxu2 %v2765_v37  ;;  %488 = vmatpush.msra.mxu1 %v2727_v31 }
  0x2d   : > { %2321 = vmatpush.msra.mxu3 %v2774_v39  ;;  %424 = vmatpush.msra.mxu0 %v2734_v32 }
  0x2e   : > { %2306 = vmatpush.msra.mxu2 %v2781_v40  ;;  %489 = vmatpush.msra.mxu1 %v2740_v33 }
  0x2f   : > { %305 = vperm.xlu0 %2373, %v2592_v9   ;;  %2377 = vset.pattern.permute.xlu1 %v2461_v10 }
  0x30   : > { %554 = vperm.xlu1 %2377, %v2597_v11   ;;  %2322 = vmatpush.msra.mxu3 %v2788_v41 }
  0x31   : > { %2378 = vset.pattern.permute.xlu2 %v2460_v0  ;;  %2307 = vmatpush.msra.mxu2 %v2796_v42 }
  0x32   : > { %308 = vperm.xlu2 %2378, %v2597_v11   ;;  %2323 = vmatpush.msra.mxu3 %v2802_v43 }
  0x33   : > { %2308 = vmatpush.msra.mxu2 %v2809_v44  ;;  %425 = vmatpush.msra.mxu0 %v2748_v34 }
  0x34   : > { %2324 = vmatpush.msra.mxu3 %v2817_v45  ;;  %490 = vmatpush.msra.mxu1 %v2758_v36 }
  0x35   : > { %2309 = vmatpush.msra.mxu2 %v2824_v46  ;;  %426 = vmatpush.msra.mxu0 %v2765_v37 }
  0x36   : > { %2325 = vmatpush.msra.mxu3 %v2830_v47  ;;  %491 = vmatpush.msra.mxu1 %v2774_v39 }
  0x37   : > { %2379 = vset.pattern.permute.xlu0 %v2461_v10  ;;  %427 = vmatpush.msra.mxu0 %v2781_v40 }
  0x38   : > { %2380 = vset.pattern.permute.xlu1 %v2460_v0  ;;  %557 = vperm.xlu0 %2379, %v2605_v12  }
  0x39   : > { %311 = vperm.xlu1 %2380, %v2605_v12   ;;  %492 = vmatpush.msra.mxu1 %v2788_v41 }
  0x3a   : > { %2381 = vset.pattern.permute.xlu2 %v2461_v10  ;;  %428 = vmatpush.msra.mxu0 %v2796_v42 }
  0x3b   : > { %560 = vperm.xlu2 %2381, %v2612_v13   ;;  %493 = vmatpush.msra.mxu1 %v2802_v43 }
  0x3c   : > { %429 = vmatpush.msra.mxu0 %v2809_v44  ;;  %2310 = vmatpush.msra.mxu2 %v2862_v48 }
  0x3d   : > { %494 = vmatpush.msra.mxu1 %v2817_v45  ;;  %2326 = vmatpush.msra.mxu3 %v2867_v49 }
  0x3e   : > { %430 = vmatpush.msra.mxu0 %v2824_v46  ;;  %662 = vmatpush.msrb.mxu2 %v2618_v14 }
  0x3f   : > { %495 = vmatpush.msra.mxu1 %v2830_v47  ;;  %727 = vmatpush.msrb.mxu3 %v2623_v15 }
  0x40   : > { %2382 = vset.pattern.permute.xlu0 %v2460_v0  ;;  %431 = vmatpush.msra.mxu0 %v2862_v48 }
  0x41   : > { %314 = vperm.xlu1 %2380, %v2612_v13   ;;  %317 = vperm.xlu0 %2382, %v2645_v19  }
  0x42   : > { %496 = vmatpush.msra.mxu1 %v2867_v49  ;;  %663 = vmatpush.msrb.mxu2 %v2628_v16 }
  0x43   : > { %563 = vperm.xlu2 %2381, %v2645_v19   ;;  %728 = vmatpush.msrb.mxu3 %v2635_v17 }
  0x44   : > { %664 = vmatpush.msrb.mxu2 %v2641_v18 }
  0x45   : > { %729 = vmatpush.msrb.mxu3 %v2653_v20 }
  0x46   : > { %665 = vmatpush.msrb.mxu2 %v2658_v21 }
  0x47   : > { %730 = vmatpush.msrb.mxu3 %v2668_v22 }
  0x48   : > { %666 = vmatpush.msrb.mxu2 %v2675_v23 }
  0x49   : > { %2383 = vset.pattern.permute.xlu1 %v2461_v10  ;;  %2385 = vset.pattern.permute.xlu0 %v2461_v10 }
  0x4a   : > { %566 = vperm.xlu1 %2383, %v2706_v28   ;;  %572 = vperm.xlu0 %2385, %v2751_v35  }
  0x4b   : > { %2384 = vset.pattern.permute.xlu2 %v2460_v0  ;;  %667 = vmatpush.msrb.mxu2 %v2689_v25 }
  0x4c   : > { %320 = vperm.xlu2 %2384, %v2706_v28   ;;  %731 = vmatpush.msrb.mxu3 %v2680_v24 }
  0x4d   : > { %668 = vmatpush.msrb.mxu2 %v2702_v27 }
  0x4e   : > { %732 = vmatpush.msrb.mxu3 %v2695_v26 }
  0x4f   : > { %669 = vmatpush.msrb.mxu2 %v2719_v30 }
  0x50   : > { %733 = vmatpush.msrb.mxu3 %v2712_v29 }
  0x51   : > { %670 = vmatpush.msrb.mxu2 %v2734_v32 }
  0x52   : > { %569 = vperm.xlu1 %2383, %v2768_v38   ;;  %584 = vperm.xlu0 %2385, %v2572_v4  }
  0x53   : > { %734 = vmatpush.msrb.mxu3 %v2727_v31  ;;  %671 = vmatpush.msrb.mxu2 %v2748_v34 }
  0x54   : > { %323 = vperm.xlu2 %2384, %v2768_v38  }
  0x55   : > { %735 = vmatpush.msrb.mxu3 %v2740_v33  ;;  %672 = vmatpush.msrb.mxu2 %v2765_v37 }
  0x57   : > { %736 = vmatpush.msrb.mxu3 %v2758_v36  ;;  %673 = vmatpush.msrb.mxu2 %v2781_v40 }
  0x59   : > { %737 = vmatpush.msrb.mxu3 %v2774_v39  ;;  %674 = vmatpush.msrb.mxu2 %v2796_v42 }
  0x5a   : > { %2386 = vset.pattern.permute.xlu1 %v2460_v0  ;;  %593 = vperm.xlu0 %2385, %v2587_v8  }
  0x5b   : > { %326 = vperm.xlu1 %2386, %v2751_v35   ;;  %738 = vmatpush.msrb.mxu3 %v2788_v41 }
  0x5c   : > { %2387 = vset.pattern.permute.xlu2 %v2461_v10  ;;  %675 = vmatpush.msrb.mxu2 %v2809_v44 }
  0x5d   : > { %575 = vperm.xlu2 %2387, %v2563_v2   ;;  %739 = vmatpush.msrb.mxu3 %v2802_v43 }
  0x5e   : > { %676 = vmatpush.msrb.mxu2 %v2824_v46 }
  0x5f   : > { %740 = vmatpush.msrb.mxu3 %v2817_v45 }
  0x60   : > { %677 = vmatpush.msrb.mxu2 %v2862_v48 }
  0x61   : > { %741 = vmatpush.msrb.mxu3 %v2830_v47 }
  0x62   : > { %2390 = vset.pattern.permute.xlu0 %v2463_v63 }
  0x63   : > { %2388 = vset.pattern.permute.xlu1 %v2461_v10  ;;  %742 = vmatpush.msrb.mxu3 %v2867_v49 }
  0x64   : > { %578 = vperm.xlu1 %2388, %v2575_v5   ;;  %1027 = vperm.xlu0 %2390, %v2597_v11  }
  0x65   : > { %581 = vperm.xlu2 %2387, %v2560_v1  }
  0x6c   : > { %587 = vperm.xlu1 %2388, %v2568_v3   ;;  %1042 = vperm.xlu0 %2390, %v2768_v38  }
  0x6d   : > { %590 = vperm.xlu2 %2387, %v2578_v6  }
  0x72   : > { %v2908_v53 = vpop.permute.xlu2 %341 }
  0x73   : > { %vm376_vm11 = vcmp.eq.s32.totalorder %v2908_v53, %v2899_v51  ;;  %vm377_vm13 = vcmp.eq.s32.totalorder %v2908_v53, %v2906_v52 }
  0x74   : > { %596 = vperm.xlu1 %2388, %v2584_v7   ;;  %1051 = vperm.xlu0 %2390, %v2575_v5  }
  0x75   : > { %2389 = vset.pattern.permute.xlu2 %v2463_v63 }
  0x76   : > { %1024 = vperm.xlu2 %2389, %v2592_v9  }
  0x7a   : > { %v2923_v57 = vpop.permute.xlu2 %344 }
  0x7c   : > { %2391 = vset.pattern.permute.xlu1 %v2463_v63  ;;  %1060 = vperm.xlu0 %2390, %v2568_v3  }
  0x7d   : > { %1030 = vperm.xlu1 %2391, %v2605_v12  }
  0x7e   : > { %1033 = vperm.xlu2 %2389, %v2612_v13  }
  0x83   : > { %v2947_v62 = vpop.permute.xlu2 %551 }
  0x84   : > { %1069 = vperm.xlu0 %2390, %v2584_v7  }
  0x85   : > { %1036 = vperm.xlu1 %2391, %v2645_v19  }
  0x86   : > { %1039 = vperm.xlu2 %2389, %v2706_v28  }
  0x89   : > { %v336_v54 = vpop.permute.xlu1 %335  ;;  %v330_v55 = vpop.permute.xlu0 %329 }
  0x8a   : > { %vm368_vm0 = vcmp.eq.s32.totalorder %v330_v55, %v2899_v51  ;;  %vm369_vm1 = vcmp.eq.s32.totalorder %v330_v55, %v2906_v52  ;;  %vm372_vm4 = vcmp.eq.s32.totalorder %v336_v54, %v2899_v51  ;;  %vm373_vm5 = vcmp.eq.s32.totalorder %v336_v54, %v2906_v52 }
  0x8b   : > { %2103 = vmatmul.msk.f32.vlgmr.msra.gmra.mxu2 %vm368_vm0, %v2462_v56  ;;  %2119 = vmatmul.msk.f32.vlgmr.msra.gmra.mxu3 %vm369_vm1, %v2462_v56  ;;  %vm378_vm0 = vcmp.eq.s32.totalorder %v2923_v57, %v2899_v51  ;;  %vm379_vm1 = vcmp.eq.s32.totalorder %v2923_v57, %v2906_v52 }
  0x8c   : > { %1135 = vmatpush.msra.mxu2 %v2618_v14  ;;  %1200 = vmatpush.msra.mxu3 %v2623_v15  ;;  %v309_v50 = vpop.permute.xlu2 %308 }
  0x8d   : > { %vm354_vm10 = vcmp.eq.s32.totalorder %v309_v50, %v2899_v51  ;;  %vm355_vm12 = vcmp.eq.s32.totalorder %v309_v50, %v2906_v52  ;;  %1045 = vperm.xlu1 %2391, %v2751_v35  }
  0x8e   : > { %1136 = vmatpush.msra.mxu2 %v2628_v16  ;;  %1201 = vmatpush.msra.mxu3 %v2635_v17 }
  0x8f   : > { %1048 = vperm.xlu2 %2389, %v2563_v2  }
  0x90   : > { %1137 = vmatpush.msra.mxu2 %v2641_v18  ;;  %1202 = vmatpush.msra.mxu3 %v2653_v20 }
  0x91   : > { %v339_v58 = vpop.permute.xlu1 %338  ;;  %v333_v59 = vpop.permute.xlu0 %332 }
  0x92   : > { %vm370_vm2 = vcmp.eq.s32.totalorder %v333_v59, %v2899_v51  ;;  %vm371_vm3 = vcmp.eq.s32.totalorder %v333_v59, %v2906_v52  ;;  %1138 = vmatpush.msra.mxu2 %v2658_v21  ;;  %1203 = vmatpush.msra.mxu3 %v2668_v22  ;;  %vm374_vm7 = vcmp.eq.s32.totalorder %v339_v58, %v2899_v51 }
  0x93   : > { %2104 = vmatmul.msk.f32.gmra.mxu2 %vm370_vm2, %v2462_v56  ;;  %2120 = vmatmul.msk.f32.gmra.mxu3 %vm371_vm3, %v2462_v56  ;;  %vm375_vm9 = vcmp.eq.s32.totalorder %v339_v58, %v2906_v52 }
  0x94   : > { %1139 = vmatpush.msra.mxu2 %v2675_v23  ;;  %1204 = vmatpush.msra.mxu3 %v2680_v24 }
  0x95   : > { %v2990_v53 = vpop.permute.xlu2 %560  ;;  %1054 = vperm.xlu1 %2391, %v2560_v1  }
  0x96   : > { %1140 = vmatpush.msra.mxu2 %v2689_v25  ;;  %1205 = vmatpush.msra.mxu3 %v2695_v26 }
  0x97   : > { %1057 = vperm.xlu2 %2389, %v2572_v4  }
  0x98   : > { %1141 = vmatpush.msra.mxu2 %v2702_v27  ;;  %1206 = vmatpush.msra.mxu3 %v2712_v29 }
  0x99   : > { %v2940_v60 = vpop.permute.xlu0 %347  ;;  %v2942_v61 = vpop.permute.xlu1 %350 }
  0x9a   : > { %1142 = vmatpush.msra.mxu2 %v2719_v30  ;;  %1207 = vmatpush.msra.mxu3 %v2727_v31 }
  0x9b   : > { %2105 = vmatmul.msk.f32.gmra.mxu2 %vm372_vm4, %v2462_v56  ;;  %2121 = vmatmul.msk.f32.gmra.mxu3 %vm373_vm5, %v2462_v56  ;;  %vm380_vm4 = vcmp.eq.s32.totalorder %v2940_v60, %v2899_v51  ;;  %vm381_vm5 = vcmp.eq.s32.totalorder %v2940_v60, %v2906_v52 }
  0x9c   : > { %1143 = vmatpush.msra.mxu2 %v2734_v32  ;;  %1208 = vmatpush.msra.mxu3 %v2740_v33 }
  0x9d   : > { %v3015_v57 = vpop.permute.xlu2 %563  ;;  %1063 = vperm.xlu1 %2391, %v2578_v6  }
  0x9e   : > { %1144 = vmatpush.msra.mxu2 %v2748_v34  ;;  %1209 = vmatpush.msra.mxu3 %v2758_v36 }
  0x9f   : > { %1066 = vperm.xlu2 %2389, %v2587_v8  }
  0xa0   : > { %1145 = vmatpush.msra.mxu2 %v2765_v37  ;;  %1210 = vmatpush.msra.mxu3 %v2774_v39 }
  0xa1   : > { %v306_v0 = vpop.permute.xlu0 %305 }
  0xa2   : > { %vm352_vm6 = vcmp.eq.s32.totalorder %v306_v0, %v2899_v51  ;;  %vm353_vm8 = vcmp.eq.s32.totalorder %v306_v0, %v2906_v52  ;;  %v2959_v10 = vpop.permute.xlu1 %554  ;;  %1146 = vmatpush.msra.mxu2 %v2781_v40  ;;  %1211 = vmatpush.msra.mxu3 %v2788_v41 }
  0xa3   : > { %2095 = vmatmul.msk.f32.vlgmr.msra.gmra.mxu0 %vm352_vm6, %v2462_v56  ;;  %2106 = vmatmul.msk.f32.gmra.mxu2 %vm374_vm7, %v2462_v56 }
  0xa4   : > { %2111 = vmatmul.msk.f32.vlgmr.msra.gmra.mxu1 %vm353_vm8, %v2462_v56  ;;  %2122 = vmatmul.msk.f32.gmra.mxu3 %vm375_vm9, %v2462_v56  ;;  %vm382_vm8 = vcmp.eq.s32.totalorder %v2942_v61, %v2899_v51  ;;  %vm383_vm9 = vcmp.eq.s32.totalorder %v2942_v61, %v2906_v52 }
  0xa5   : > { %1147 = vmatpush.msra.mxu2 %v2796_v42  ;;  %1212 = vmatpush.msra.mxu3 %v2802_v43 }
  0xa6   : > { %v321_v60 = vpop.permute.xlu2 %320 }
  0xa7   : > { %1148 = vmatpush.msra.mxu2 %v2809_v44  ;;  %1213 = vmatpush.msra.mxu3 %v2817_v45 }
  0xa9   : > { %1149 = vmatpush.msra.mxu2 %v2824_v46  ;;  %1214 = vmatpush.msra.mxu3 %v2830_v47 }
  0xaa   : > { %v3005_v55 = vpop.permute.xlu0 %557 }
  0xab   : > { %2096 = vmatmul.msk.f32.gmra.mxu0 %vm354_vm10, %v2462_v56  ;;  %2107 = vmatmul.msk.f32.gmra.mxu2 %vm376_vm11, %v2462_v56  ;;  %v312_v54 = vpop.permute.xlu1 %311  ;;  %vm598_vm10 = vcmp.eq.s32.totalorder %v2947_v62, %v2899_v51  ;;  %vm362_vm11 = vcmp.eq.s32.totalorder %v321_v60, %v2899_v51 }
  0xac   : > { %2112 = vmatmul.msk.f32.gmra.mxu1 %vm355_vm12, %v2462_v56  ;;  %2123 = vmatmul.msk.f32.gmra.mxu3 %vm377_vm13, %v2462_v56  ;;  %vm356_vm14 = vcmp.eq.s32.totalorder %v312_v54, %v2899_v51  ;;  %vm357_vm15 = vcmp.eq.s32.totalorder %v312_v54, %v2906_v52  ;;  %vm599_vm12 = vcmp.eq.s32.totalorder %v2947_v62, %v2906_v52 }
  0xad   : > { %1150 = vmatpush.msra.mxu2 %v2862_v48  ;;  %1215 = vmatpush.msra.mxu3 %v2867_v49  ;;  %vm363_vm13 = vcmp.eq.s32.totalorder %v321_v60, %v2906_v52 }
  0xae   : > { %v324_v0 = vpop.permute.xlu2 %323 }
  0xb3   : > { %2097 = vmatmul.msk.f32.gmra.mxu0 %vm356_vm14, %v2462_v56  ;;  %2108 = vmatmul.msk.f32.gmra.mxu2 %vm378_vm0, %v2462_v56  ;;  %v315_v58 = vpop.permute.xlu1 %314  ;;  %v318_v59 = vpop.permute.xlu0 %317  ;;  %vm364_vm14 = vcmp.eq.s32.totalorder %v324_v0, %v2899_v51  ;;  %vm365_vm0 = vcmp.eq.s32.totalorder %v324_v0, %v2906_v52 }
  0xb4   : > { %2113 = vmatmul.msk.f32.gmra.mxu1 %vm357_vm15, %v2462_v56  ;;  %2124 = vmatmul.msk.f32.gmra.mxu3 %vm379_vm1, %v2462_v56  ;;  %vm358_vm2 = vcmp.eq.s32.totalorder %v315_v58, %v2899_v51  ;;  %vm359_vm3 = vcmp.eq.s32.totalorder %v315_v58, %v2906_v52  ;;  %vm360_vm6 = vcmp.eq.s32.totalorder %v318_v59, %v2899_v51 }
  0xb5   : > { %vm361_vm7 = vcmp.eq.s32.totalorder %v318_v59, %v2906_v52  ;;  %vm600_vm15 = vcmp.eq.s32.totalorder %v2959_v10, %v2899_v51  ;;  %vm601_vm1 = vcmp.eq.s32.totalorder %v2959_v10, %v2906_v52 }
  0xbb   : > { %2098 = vmatmul.msk.f32.gmra.mxu0 %vm358_vm2, %v2462_v56  ;;  %2109 = vmatmul.msk.f32.gmra.mxu2 %vm380_vm4, %v2462_v56 }
  0xbc   : > { %2114 = vmatmul.msk.f32.gmra.mxu1 %vm359_vm3, %v2462_v56  ;;  %2125 = vmatmul.msk.f32.gmra.mxu3 %vm381_vm5, %v2462_v56  ;;  %v3030_v63 = vpop.permute.xlu1 %566  ;;  %vm602_vm3 = vcmp.eq.s32.totalorder %v3005_v55, %v2899_v51  ;;  %vm603_vm5 = vcmp.eq.s32.totalorder %v3005_v55, %v2906_v52 }
  0xc3   : > { %2099 = vmatmul.msk.f32.gmra.mxu0 %vm360_vm6, %v2462_v56  ;;  %2110 = vmatmul.msk.f32.gmra.mxu2 %vm382_vm8, %v2462_v56  ;;  %vm604_vm6 = vcmp.eq.s32.totalorder %v2990_v53, %v2899_v51  ;;  %vm606_vm8 = vcmp.eq.s32.totalorder %v3015_v57, %v2899_v51 }
  0xc4   : > { %2115 = vmatmul.msk.f32.gmra.mxu1 %vm361_vm7, %v2462_v56  ;;  %2126 = vmatmul.msk.f32.gmra.mxu3 %vm383_vm9, %v2462_v56  ;;  %v570_v61 = vpop.permute.xlu1 %569  ;;  %vm605_vm7 = vcmp.eq.s32.totalorder %v2990_v53, %v2906_v52  ;;  %vm607_vm9 = vcmp.eq.s32.totalorder %v3015_v57, %v2906_v52 }
  0xcb   : > { %2100 = vmatmul.msk.f32.gmra.mxu0 %vm362_vm11, %v2462_v56  ;;  %2127 = vmatmul.msk.f32.vlgmr.msrb.gmra.mxu2 %vm598_vm10, %v2462_v56  ;;  %vm608_vm10 = vcmp.eq.s32.totalorder %v3030_v63, %v2899_v51  ;;  %vm609_vm11 = vcmp.eq.s32.totalorder %v3030_v63, %v2906_v52 }
  0xcc   : > { %2116 = vmatmul.msk.f32.gmra.mxu1 %vm363_vm13, %v2462_v56  ;;  %2143 = vmatmul.msk.f32.vlgmr.msrb.gmra.mxu3 %vm599_vm12, %v2462_v56  ;;  %vm610_vm12 = vcmp.eq.s32.totalorder %v570_v61, %v2899_v51  ;;  %vm611_vm13 = vcmp.eq.s32.totalorder %v570_v61, %v2906_v52 }
  0xcd   : > { %1575 = vmatpush.msrb.mxu2 %v2623_v15  ;;  %v327_v15 = vpop.permute.xlu1 %326 }
  0xce   : > { %vm366_vm2 = vcmp.eq.s32.totalorder %v327_v15, %v2899_v51  ;;  %vm367_vm4 = vcmp.eq.s32.totalorder %v327_v15, %v2906_v52 }
  0xcf   : > { %1576 = vmatpush.msrb.mxu2 %v2635_v17  ;;  %v549_v17 = vld [vmem:[%s3782_s2 + $0x18] sm:$0xff] }
  0xd0   : > { %970 = vmatpush.msrb.mxu1 %v549_v17 }
  0xd1   : > { %1577 = vmatpush.msrb.mxu2 %v2653_v20  ;;  %v548_v20 = vld [vmem:[%s3782_s2 + $0x10] sm:$0xff] }
  0xd2   : > { %971 = vmatpush.msrb.mxu1 %v548_v20 }
  0xd3   : > { %2101 = vmatmul.msk.f32.gmra.mxu0 %vm364_vm14, %v2462_v56  ;;  %2128 = vmatmul.msk.f32.gmra.mxu2 %vm600_vm15, %v2462_v56 }
  0xd4   : > { %2117 = vmatmul.msk.f32.gmra.mxu1 %vm365_vm0, %v2462_v56  ;;  %2144 = vmatmul.msk.f32.gmra.mxu3 %vm601_vm1, %v2462_v56 }
  0xd5   : > { %1578 = vmatpush.msrb.mxu2 %v2668_v22  ;;  %v573_v22 = vpop.permute.xlu0 %572 }
  0xd6   : > { %vm612_vm14 = vcmp.eq.s32.totalorder %v573_v22, %v2899_v51  ;;  %vm613_vm15 = vcmp.eq.s32.totalorder %v573_v22, %v2906_v52 }
  0xd7   : > { %1579 = vmatpush.msrb.mxu2 %v2680_v24  ;;  %v547_v24 = vld [vmem:[%s3782_s2 + $0x8] sm:$0xff] }
  0xd8   : > { %972 = vmatpush.msrb.mxu1 %v547_v24 }
  0xd9   : > { %1580 = vmatpush.msrb.mxu2 %v2695_v26  ;;  %v546_v26 = vld [vmem:[%s3782_s2] sm:$0xff] }
  0xda   : > { %973 = vmatpush.msrb.mxu1 %v546_v26 }
  0xdb   : > { %2102 = vmatmul.msk.f32.gmra.mxu0 %vm366_vm2, %v2462_v56  ;;  %2129 = vmatmul.msk.f32.gmra.mxu2 %vm602_vm3, %v2462_v56 }
  0xdc   : > { %2118 = vmatmul.msk.f32.gmra.mxu1 %vm367_vm4, %v2462_v56  ;;  %2145 = vmatmul.msk.f32.gmra.mxu3 %vm603_vm5, %v2462_v56 }
  0xdd   : > { %1581 = vmatpush.msrb.mxu2 %v2712_v29  ;;  %1510 = vmatpush.msra.mxu1 %v2618_v14  ;;  %v576_v29 = vpop.permute.xlu2 %575  ;;  %v579_v14 = vpop.permute.xlu1 %578 }
  0xde   : > { %vm614_vm0 = vcmp.eq.s32.totalorder %v576_v29, %v2899_v51  ;;  %vm615_vm1 = vcmp.eq.s32.totalorder %v576_v29, %v2906_v52  ;;  %vm616_vm2 = vcmp.eq.s32.totalorder %v579_v14, %v2899_v51  ;;  %vm617_vm3 = vcmp.eq.s32.totalorder %v579_v14, %v2906_v52 }
  0xdf   : > { %1582 = vmatpush.msrb.mxu2 %v2727_v31  ;;  %1511 = vmatpush.msra.mxu1 %v2628_v16 }
  0xe1   : > { %1583 = vmatpush.msrb.mxu2 %v2740_v33  ;;  %1512 = vmatpush.msra.mxu1 %v2641_v18 }
  0xe3   : > { %2130 = vmatmul.msk.f32.gmra.mxu2 %vm604_vm6, %v2462_v56  ;;  %1513 = vmatpush.msra.mxu1 %v2658_v21  ;;  %vm796_vm6 = vcmask 261120  }
  0xe4   : > { %2146 = vmatmul.msk.f32.gmra.mxu3 %vm605_vm7, %v2462_v56  ;;  %1584 = vmatpush.msrb.mxu2 %v2758_v36  ;;  %v2464_v36 = vmov 3  }
  0xe5   : > { %1514 = vmatpush.msra.mxu1 %v2675_v23  ;;  %2392 = vset.pattern.permute.xlu1 %v2464_v36 }
  0xe6   : > { %1585 = vmatpush.msrb.mxu2 %v2774_v39  ;;  %2394 = vset.pattern.permute.xlu0 %v2464_v36  ;;  %v795_v39 = vld [vmem:[%s3782_s2 + $0x38] sm:$0xff] }
  0xe7   : > { %1515 = vmatpush.msra.mxu1 %v2689_v25  ;;  %1399 = vperm.xlu1 %2392, %v2592_v9  }
  0xe8   : > { %1586 = vmatpush.msrb.mxu2 %v2788_v41  ;;  %1405 = vperm.xlu0 %2394, %v2605_v12   ;;  %v582_v12 = vpop.permute.xlu2 %581 }
  0xe9   : > { %2393 = vset.pattern.permute.xlu2 %v2464_v36  ;;  %1516 = vmatpush.msra.mxu1 %v2702_v27  ;;  %vm618_vm4 = vcmp.eq.s32.totalorder %v582_v12, %v2899_v51  ;;  %vm619_vm5 = vcmp.eq.s32.totalorder %v582_v12, %v2906_v52 }
  0xea   : > { %1587 = vmatpush.msrb.mxu2 %v2802_v43  ;;  %1402 = vperm.xlu2 %2393, %v2597_v11  }
  0xeb   : > { %2131 = vmatmul.msk.f32.gmra.mxu2 %vm606_vm8, %v2462_v56  ;;  %1517 = vmatpush.msra.mxu1 %v2719_v30 }
  0xec   : > { %2147 = vmatmul.msk.f32.gmra.mxu3 %vm607_vm9, %v2462_v56  ;;  %1588 = vmatpush.msrb.mxu2 %v2817_v45 }
  0xed   : > { %1518 = vmatpush.msra.mxu1 %v2734_v32  ;;  %857 = vmatpush.msrb.mxu0 %v795_v39 }
  0xee   : > { %1589 = vmatpush.msrb.mxu2 %v2830_v47 }
  0xef   : > { %1408 = vperm.xlu1 %2392, %v2612_v13   ;;  %1519 = vmatpush.msra.mxu1 %v2748_v34 }
  0xf0   : > { %1590 = vmatpush.msrb.mxu2 %v2867_v49  ;;  %1420 = vperm.xlu0 %2394, %v2751_v35   ;;  %v588_v35 = vpop.permute.xlu1 %587  ;;  %v591_v41 = vpop.permute.xlu2 %590 }
  0xf1   : > { %1520 = vmatpush.msra.mxu1 %v2765_v37  ;;  %vm622_vm9 = vcmp.eq.s32.totalorder %v588_v35, %v2899_v51 }
  0xf2   : > { %1411 = vperm.xlu2 %2393, %v2645_v19   ;;  %v585_v19 = vpop.permute.xlu0 %584 }
  0xf3   : > { %2132 = vmatmul.msk.f32.gmra.mxu2 %vm608_vm10, %v2462_v56  ;;  %1521 = vmatpush.msra.mxu1 %v2781_v40  ;;  %vm620_vm7 = vcmp.eq.s32.totalorder %v585_v19, %v2899_v51  ;;  %vm621_vm8 = vcmp.eq.s32.totalorder %v585_v19, %v2906_v52  ;;  %vm623_vm10 = vcmp.eq.s32.totalorder %v588_v35, %v2906_v52  ;;  %v793_v40 = vld [vmem:[%s3782_s2 + $0x28] sm:$0xff] }
  0xf4   : > { %2148 = vmatmul.msk.f32.gmra.mxu3 %vm609_vm11, %v2462_v56  ;;  %vm624_vm11 = vcmp.eq.s32.totalorder %v591_v41, %v2899_v51 }
  0xf5   : > { %1522 = vmatpush.msra.mxu1 %v2796_v42 }
  0xf7   : > { %1414 = vperm.xlu1 %2392, %v2706_v28   ;;  %1523 = vmatpush.msra.mxu1 %v2809_v44  ;;  %v792_v44 = vld [vmem:[%s3782_s2 + $0x20] sm:$0xff] }
  0xf8   : > { %1429 = vperm.xlu0 %2394, %v2560_v1   ;;  %v597_v54 = vpop.permute.xlu1 %596  ;;  %v1025_v59 = vpop.permute.xlu2 %1024 }
  0xf9   : > { %1524 = vmatpush.msra.mxu1 %v2824_v46 }
  0xfa   : > { %1417 = vperm.xlu2 %2393, %v2768_v38   ;;  %v594_v47 = vpop.permute.xlu0 %593 }
  0xfb   : > { %2133 = vmatmul.msk.f32.gmra.mxu2 %vm610_vm12, %v2462_v56  ;;  %1525 = vmatpush.msra.mxu1 %v2862_v48  ;;  %vm625_vm12 = vcmp.eq.s32.totalorder %v591_v41, %v2906_v52 }
  0xfc   : > { %2149 = vmatmul.msk.f32.gmra.mxu3 %vm611_vm13, %v2462_v56  ;;  %vm626_vm13 = vcmp.eq.s32.totalorder %v594_v47, %v2899_v51 }
  0xff   : > { %1423 = vperm.xlu1 %2392, %v2563_v2   ;;  %v794_v2 = vld [vmem:[%s3782_s2 + $0x30] sm:$0xff] }
 0x100   : > { %1438 = vperm.xlu0 %2394, %v2578_v6   ;;  %858 = vmatpush.msrb.mxu0 %v794_v2  ;;  %v1031_v14 = vpop.permute.xlu1 %1030 }
 0x102   : > { %1426 = vperm.xlu2 %2393, %v2575_v5   ;;  %859 = vmatpush.msrb.mxu0 %v793_v40  ;;  %v1028_v20 = vpop.permute.xlu0 %1027 }
 0x103   : > { %2134 = vmatmul.msk.f32.gmra.mxu2 %vm612_vm14, %v2462_v56  ;;  %vm627_vm14 = vcmp.eq.s32.totalorder %v594_v47, %v2906_v52 }
 0x104   : > { %2150 = vmatmul.msk.f32.gmra.mxu3 %vm613_vm15, %v2462_v56  ;;  %860 = vmatpush.msrb.mxu0 %v792_v44  ;;  %vm628_vm15 = vcmp.eq.s32.totalorder %v597_v54, %v2899_v51 }
 0x107   : > { %1432 = vperm.xlu1 %2392, %v2572_v4  }
 0x10a   : > { %1435 = vperm.xlu2 %2393, %v2568_v3  }
 0x10b   : > { %2135 = vmatmul.msk.f32.gmra.mxu2 %vm614_vm0, %v2462_v56  ;;  %vm629_vm0 = vcmp.eq.s32.totalorder %v597_v54, %v2906_v52 }
 0x10c   : > { %2151 = vmatmul.msk.f32.gmra.mxu3 %vm615_vm1, %v2462_v56  ;;  %vm1071_vm1 = vcmp.eq.s32.totalorder %v1025_v59, %v2899_v51 }
 0x10e   : > { %v457_v31 = vpop.f32.mrf.mxu2  ;;  %v522_v33 = vpop.f32.mrf.mxu3 }
 0x10f   : > { %v3135_v16 = vadd.f32 %v522_v33, %v457_v31  ;;  %1441 = vperm.xlu1 %2392, %v2587_v8  }
 0x112   : > { %1444 = vperm.xlu2 %2393, %v2584_v7  }
 0x113   : > { %2136 = vmatmul.msk.f32.gmra.mxu2 %vm616_vm2, %v2462_v56  ;;  %vm1072_vm2 = vcmp.eq.s32.totalorder %v1025_v59, %v2906_v52 }
 0x114   : > { %2152 = vmatmul.msk.f32.gmra.mxu3 %vm617_vm3, %v2462_v56  ;;  %vm1073_vm3 = vcmp.eq.s32.totalorder %v1028_v20, %v2899_v51 }
 0x116   : > { %v460_v18 = vpop.f32.mrf.mxu2  ;;  %v525_v21 = vpop.f32.mrf.mxu3 }
 0x117   : > { %v3147_v9 = vadd.f32 %v525_v21, %v460_v18 }
 0x11b   : > { %2137 = vmatmul.msk.f32.gmra.mxu2 %vm618_vm4, %v2462_v56  ;;  %vm1074_vm4 = vcmp.eq.s32.totalorder %v1028_v20, %v2906_v52  ;;  %v1267_v20 = vld [vmem:[%s3782_s2 + $0x50] sm:$0xff] }
 0x11c   : > { %2153 = vmatmul.msk.f32.gmra.mxu3 %vm619_vm5, %v2462_v56  ;;  %vm1075_vm5 = vcmp.eq.s32.totalorder %v1031_v14, %v2899_v51 }
 0x11e   : > { %v463_v11 = vpop.f32.mrf.mxu2  ;;  %v528_v23 = vpop.f32.mrf.mxu3 }
 0x11f   : > { %v3159_v13 = vadd.f32 %v528_v23, %v463_v11 }
 0x120   : > { %v433_v25 = vpop.f32.mrf.mxu0 }
 0x121   : > { %v498_v27 = vpop.f32.mrf.mxu1 }
 0x122   : > { %v499_v30 = vadd.f32 %v498_v27, %v433_v25  ;;  %v1034_v27 = vpop.permute.xlu2 %1033 }
 0x123   : > { %2138 = vmatmul.msk.f32.gmra.mxu2 %vm620_vm7, %v2462_v56  ;;  %vm1076_vm7 = vcmp.eq.s32.totalorder %v1031_v14, %v2906_v52 }
 0x124   : > { %2154 = vmatmul.msk.f32.gmra.mxu3 %vm621_vm8, %v2462_v56  ;;  %2175 = vmatmul.msk.f32.vlgmr.msrb.gmra.mxu1 %vm796_vm6, %v499_v30  ;;  %vm1077_vm8 = vcmp.eq.s32.totalorder %v1034_v27, %v2899_v51 }
 0x126   : > { %v466_v1 = vpop.f32.mrf.mxu2 }
 0x127   : > { %v531_v28 = vpop.f32.mrf.mxu3 }
 0x128   : > { %v3172_v32 = vadd.f32 %v531_v28, %v466_v1  ;;  %v436_v34 = vpop.f32.mrf.mxu0 }
 0x129   : > { %v501_v37 = vpop.f32.mrf.mxu1 }
 0x12a   : > { %v502_v38 = vadd.f32 %v501_v37, %v436_v34  ;;  %v1037_v34 = vpop.permute.xlu1 %1036 }
 0x12b   : > { %2139 = vmatmul.msk.f32.gmra.mxu2 %vm622_vm9, %v2462_v56  ;;  %vm1078_vm9 = vcmp.eq.s32.totalorder %v1034_v27, %v2906_v52 }
 0x12c   : > { %2155 = vmatmul.msk.f32.gmra.mxu3 %vm623_vm10, %v2462_v56  ;;  %2176 = vmatmul.msk.f32.gmra.mxu1 %vm796_vm6, %v502_v38  ;;  %vm1079_vm10 = vcmp.eq.s32.totalorder %v1037_v34, %v2899_v51  ;;  %v1040_v38 = vpop.permute.xlu2 %1039 }
 0x12e   : > { %v469_v6 = vpop.f32.mrf.mxu2 }
 0x12f   : > { %v534_v5 = vpop.f32.mrf.mxu3 }
 0x130   : > { %v3192_v42 = vadd.f32 %v534_v5, %v469_v6  ;;  %v439_v43 = vpop.f32.mrf.mxu0  ;;  %v1043_v6 = vpop.permute.xlu0 %1042 }
 0x131   : > { %v504_v45 = vpop.f32.mrf.mxu1 }
 0x132   : > { %v505_v46 = vadd.f32 %v504_v45, %v439_v43  ;;  %v1046_v5 = vpop.permute.xlu1 %1045 }
 0x133   : > { %2140 = vmatmul.msk.f32.gmra.mxu2 %vm624_vm11, %v2462_v56  ;;  %vm1080_vm11 = vcmp.eq.s32.totalorder %v1037_v34, %v2906_v52 }
 0x134   : > { %2156 = vmatmul.msk.f32.gmra.mxu3 %vm625_vm12, %v2462_v56  ;;  %2177 = vmatmul.msk.f32.gmra.mxu1 %vm796_vm6, %v505_v46  ;;  %vm1081_vm12 = vcmp.eq.s32.totalorder %v1040_v38, %v2899_v51  ;;  %v1049_v45 = vpop.permute.xlu2 %1048 }
 0x136   : > { %v472_v4 = vpop.f32.mrf.mxu2 }
 0x137   : > { %v537_v48 = vpop.f32.mrf.mxu3 }
 0x138   : > { %v3204_v49 = vadd.f32 %v537_v48, %v472_v4  ;;  %v442_v62 = vpop.f32.mrf.mxu0  ;;  %v1052_v48 = vpop.permute.xlu0 %1051 }
 0x139   : > { %v507_v10 = vpop.f32.mrf.mxu1 }
 0x13a   : > { %v508_v50 = vadd.f32 %v507_v10, %v442_v62  ;;  %v1055_v46 = vpop.permute.xlu1 %1054 }
 0x13b   : > { %2141 = vmatmul.msk.f32.gmra.mxu2 %vm626_vm13, %v2462_v56  ;;  %vm1082_vm13 = vcmp.eq.s32.totalorder %v1040_v38, %v2906_v52 }
 0x13c   : > { %2157 = vmatmul.msk.f32.gmra.mxu3 %vm627_vm14, %v2462_v56  ;;  %2178 = vmatmul.msk.f32.gmra.mxu1 %vm796_vm6, %v508_v50  ;;  %vm1083_vm14 = vcmp.eq.s32.totalorder %v1043_v6, %v2899_v51  ;;  %v1058_v62 = vpop.permute.xlu2 %1057 }
 0x13e   : > { %v475_v3 = vpop.f32.mrf.mxu2 }
 0x13f   : > { %v540_v53 = vpop.f32.mrf.mxu3 }
 0x140   : > { %v3213_v55 = vadd.f32 %v540_v53, %v475_v3  ;;  %v445_v8 = vpop.f32.mrf.mxu0  ;;  %v1061_v54 = vpop.permute.xlu0 %1060 }
 0x141   : > { %v510_v58 = vpop.f32.mrf.mxu1 }
 0x142   : > { %v511_v57 = vadd.f32 %v510_v58, %v445_v8 }
 0x143   : > { %2142 = vmatmul.msk.f32.gmra.mxu2 %vm628_vm15, %v2462_v56  ;;  %vm1084_vm15 = vcmp.eq.s32.totalorder %v1043_v6, %v2906_v52 }
 0x144   : > { %2158 = vmatmul.msk.f32.gmra.mxu3 %vm629_vm0, %v2462_v56  ;;  %2179 = vmatmul.msk.f32.gmra.mxu1 %vm796_vm6, %v511_v57  ;;  %vm1085_vm0 = vcmp.eq.s32.totalorder %v1046_v5, %v2899_v51  ;;  %v1067_v53 = vpop.permute.xlu2 %1066 }
 0x146   : > { %v478_v7 = vpop.f32.mrf.mxu2 }
 0x147   : > { %v543_v63 = vpop.f32.mrf.mxu3 }
 0x148   : > { %v3221_v60 = vadd.f32 %v543_v63, %v478_v7  ;;  %v448_v61 = vpop.f32.mrf.mxu0  ;;  %v1070_v59 = vpop.permute.xlu0 %1069 }
 0x149   : > { %v513_v0 = vpop.f32.mrf.mxu1 }
 0x14a   : > { %v514_v15 = vadd.f32 %v513_v0, %v448_v61 }
 0x14b   : > { %2191 = vmatmul.msk.f32.vlgmr.msra.gmra.mxu2 %vm1071_vm1, %v2462_v56  ;;  %vm1086_vm1 = vcmp.eq.s32.totalorder %v1046_v5, %v2906_v52 }
 0x14c   : > { %2180 = vmatmul.msk.f32.gmra.mxu1 %vm796_vm6, %v514_v15  ;;  %2207 = vmatmul.msk.f32.vlgmr.msra.gmra.mxu3 %vm1072_vm2, %v2462_v56  ;;  %vm1087_vm2 = vcmp.eq.s32.totalorder %v1049_v45, %v2899_v51 }
 0x14e   : > { %v679_v17 = vpop.f32.mrf.mxu2 }
 0x14f   : > { %v744_v22 = vpop.f32.mrf.mxu3 }
 0x150   : > { %v745_v24 = vadd.f32 %v744_v22, %v679_v17  ;;  %v451_v26 = vpop.f32.mrf.mxu0  ;;  %v1268_v17 = vld [vmem:[%s3782_s2 + $0x58] sm:$0xff] }
 0x151   : > { %v516_v29 = vpop.f32.mrf.mxu1  ;;  %1329 = vmatpush.msra.mxu0 %v1268_v17 }
 0x152   : > { %v517_v31 = vadd.f32 %v516_v29, %v451_v26  ;;  %2159 = vmatmul.msk.f32.vlgmr.msrb.gmra.mxu0 %vm796_vm6, %v745_v24  ;;  %v1266_v26 = vld [vmem:[%s3782_s2 + $0x48] sm:$0xff] }
 0x153   : > { %2192 = vmatmul.msk.f32.gmra.mxu2 %vm1073_vm3, %v2462_v56  ;;  %vm1088_vm3 = vcmp.eq.s32.totalorder %v1049_v45, %v2906_v52  ;;  %1330 = vmatpush.msra.mxu0 %v1267_v20 }
 0x154   : > { %2181 = vmatmul.msk.f32.gmra.mxu1 %vm796_vm6, %v517_v31  ;;  %2208 = vmatmul.msk.f32.gmra.mxu3 %vm1074_vm4, %v2462_v56  ;;  %vm1089_vm4 = vcmp.eq.s32.totalorder %v1052_v48, %v2899_v51 }
 0x155   : > { %1331 = vmatpush.msra.mxu0 %v1266_v26 }
 0x156   : > { %v682_v33 = vpop.f32.mrf.mxu2 }
 0x157   : > { %v747_v36 = vpop.f32.mrf.mxu3 }
 0x158   : > { %v748_v18 = vadd.f32 %v747_v36, %v682_v33  ;;  %v454_v21 = vpop.f32.mrf.mxu0  ;;  %v1265_v33 = vld [vmem:[%s3782_s2 + $0x40] sm:$0xff]  ;;  %v1643_v36 = vld [vmem:[%s3782_s2 + $0x78] sm:$0xff] }
 0x159   : > { %v519_v12 = vpop.f32.mrf.mxu1  ;;  %1332 = vmatpush.msra.mxu0 %v1265_v33  ;;  %1704 = vmatpush.msrb.mxu3 %v1643_v36 }
 0x15a   : > { %v520_v11 = vadd.f32 %v519_v12, %v454_v21  ;;  %2160 = vmatmul.msk.f32.gmra.mxu0 %vm796_vm6, %v748_v18  ;;  %v3325_v24 = vpop.permute.xlu0 %1405 }
 0x15b   : > { %2193 = vmatmul.msk.f32.gmra.mxu2 %vm1075_vm5, %v2462_v56  ;;  %vm1090_vm5 = vcmp.eq.s32.totalorder %v1052_v48, %v2906_v52 }
 0x15c   : > { %2182 = vmatmul.msk.f32.gmra.mxu1 %vm796_vm6, %v520_v11  ;;  %2209 = vmatmul.msk.f32.gmra.mxu3 %vm1076_vm7, %v2462_v56  ;;  %vm1091_vm7 = vcmp.eq.s32.totalorder %v1055_v46, %v2899_v51 }
 0x15e   : > { %v685_v23 = vpop.f32.mrf.mxu2 }
 0x15f   : > { %v750_v25 = vpop.f32.mrf.mxu3 }
 0x160   : > { %v751_v19 = vadd.f32 %v750_v25, %v685_v23 }
 0x162   : > { %2161 = vmatmul.msk.f32.gmra.mxu0 %vm796_vm6, %v751_v19  ;;  %v1421_v5 = vpop.permute.xlu0 %1420 }
 0x163   : > { %2194 = vmatmul.msk.f32.gmra.mxu2 %vm1077_vm8, %v2462_v56  ;;  %vm1092_vm8 = vcmp.eq.s32.totalorder %v1055_v46, %v2906_v52 }
 0x164   : > { %2183 = vmatmul.msk.f32.gmra.mxu1 %vm796_vm6, %v3135_v16  ;;  %2210 = vmatmul.msk.f32.gmra.mxu3 %vm1078_vm9, %v2462_v56 }
 0x166   : > { %v688_v30 = vpop.f32.mrf.mxu2 }
 0x167   : > { %v753_v1 = vpop.f32.mrf.mxu3 }
 0x168   : > { %v754_v28 = vadd.f32 %v753_v1, %v688_v30 }
 0x16a   : > { %2162 = vmatmul.msk.f32.gmra.mxu0 %vm796_vm6, %v754_v28 }
 0x16b   : > { %2195 = vmatmul.msk.f32.gmra.mxu2 %vm1079_vm10, %v2462_v56  ;;  %vm1093_vm10 = vcmp.eq.s32.totalorder %v1058_v62, %v2899_v51 }
 0x16c   : > { %2184 = vmatmul.msk.f32.gmra.mxu1 %vm796_vm6, %v3147_v9  ;;  %2211 = vmatmul.msk.f32.gmra.mxu3 %vm1080_vm11, %v2462_v56  ;;  %vm1094_vm11 = vcmp.eq.s32.totalorder %v1058_v62, %v2906_v52 }
 0x16e   : > { %v691_v16 = vpop.f32.mrf.mxu2 }
 0x16f   : > { %v756_v35 = vpop.f32.mrf.mxu3 }
 0x170   : > { %v757_v37 = vadd.f32 %v756_v35, %v691_v16 }
 0x172   : > { %2163 = vmatmul.msk.f32.gmra.mxu0 %vm796_vm6, %v757_v37 }
 0x173   : > { %2196 = vmatmul.msk.f32.gmra.mxu2 %vm1081_vm12, %v2462_v56 }
 0x174   : > { %2185 = vmatmul.msk.f32.gmra.mxu1 %vm796_vm6, %v3159_v13  ;;  %2212 = vmatmul.msk.f32.gmra.mxu3 %vm1082_vm13, %v2462_v56  ;;  %vm1095_vm13 = vcmp.eq.s32.totalorder %v1061_v54, %v2899_v51 }
 0x176   : > { %v694_v9 = vpop.f32.mrf.mxu2 }
 0x177   : > { %v759_v39 = vpop.f32.mrf.mxu3 }
 0x178   : > { %v760_v2 = vadd.f32 %v759_v39, %v694_v9 }
 0x17a   : > { %2164 = vmatmul.msk.f32.gmra.mxu0 %vm796_vm6, %v760_v2 }
 0x17b   : > { %2197 = vmatmul.msk.f32.gmra.mxu2 %vm1083_vm14, %v2462_v56  ;;  %vm1096_vm14 = vcmp.eq.s32.totalorder %v1061_v54, %v2906_v52 }
 0x17c   : > { %2186 = vmatmul.msk.f32.gmra.mxu1 %vm796_vm6, %v3172_v32  ;;  %2213 = vmatmul.msk.f32.gmra.mxu3 %vm1084_vm15, %v2462_v56  ;;  %vm1450_vm15 = vcmp.eq.s32.totalorder %v3325_v24, %v2899_v51 }
 0x17e   : > { %v697_v13 = vpop.f32.mrf.mxu2 }
 0x17f   : > { %v762_v40 = vpop.f32.mrf.mxu3 }
 0x180   : > { %v763_v41 = vadd.f32 %v762_v40, %v697_v13  ;;  %v1642_v13 = vld [vmem:[%s3782_s2 + $0x70] sm:$0xff] }
 0x181   : > { %1705 = vmatpush.msrb.mxu3 %v1642_v13 }
 0x182   : > { %2165 = vmatmul.msk.f32.gmra.mxu0 %vm796_vm6, %v763_v41 }
 0x183   : > { %2198 = vmatmul.msk.f32.gmra.mxu2 %vm1085_vm0, %v2462_v56 }
 0x184   : > { %2187 = vmatmul.msk.f32.gmra.mxu1 %vm796_vm6, %v3192_v42  ;;  %2214 = vmatmul.msk.f32.gmra.mxu3 %vm1086_vm1, %v2462_v56 }
 0x186   : > { %v700_v32 = vpop.f32.mrf.mxu2 }
 0x187   : > { %v765_v43 = vpop.f32.mrf.mxu3 }
 0x188   : > { %v766_v44 = vadd.f32 %v765_v43, %v700_v32 }
 0x18a   : > { %2166 = vmatmul.msk.f32.gmra.mxu0 %vm796_vm6, %v766_v44 }
 0x18b   : > { %2199 = vmatmul.msk.f32.gmra.mxu2 %vm1087_vm2, %v2462_v56 }
 0x18c   : > { %2188 = vmatmul.msk.f32.gmra.mxu1 %vm796_vm6, %v3204_v49  ;;  %2215 = vmatmul.msk.f32.gmra.mxu3 %vm1088_vm3, %v2462_v56  ;;  %v1064_v49 = vpop.permute.xlu1 %1063  ;;  %vm1099_vm3 = vcmp.eq.s32.totalorder %v1067_v53, %v2899_v51 }
 0x18d   : > { %vm1097_vm0 = vcmp.eq.s32.totalorder %v1064_v49, %v2899_v51  ;;  %vm1098_vm1 = vcmp.eq.s32.totalorder %v1064_v49, %v2906_v52 }
 0x18e   : > { %v703_v42 = vpop.f32.mrf.mxu2 }
 0x18f   : > { %v768_v4 = vpop.f32.mrf.mxu3 }
 0x190   : > { %v769_v47 = vadd.f32 %v768_v4, %v703_v42 }
 0x192   : > { %2167 = vmatmul.msk.f32.gmra.mxu0 %vm796_vm6, %v769_v47 }
 0x193   : > { %2200 = vmatmul.msk.f32.gmra.mxu2 %vm1089_vm4, %v2462_v56  ;;  %vm1100_vm4 = vcmp.eq.s32.totalorder %v1067_v53, %v2906_v52  ;;  %v1430_v53 = vpop.permute.xlu0 %1429 }
 0x194   : > { %2189 = vmatmul.msk.f32.gmra.mxu1 %vm796_vm6, %v3213_v55  ;;  %2216 = vmatmul.msk.f32.gmra.mxu3 %vm1090_vm5, %v2462_v56  ;;  %v3295_v8 = vpop.permute.xlu1 %1399 }
 0x195   : > { %vm1446_vm9 = vcmp.eq.s32.totalorder %v3295_v8, %v2899_v51 }
 0x196   : > { %v706_v10 = vpop.f32.mrf.mxu2 }
 0x197   : > { %v771_v50 = vpop.f32.mrf.mxu3 }
 0x198   : > { %v772_v3 = vadd.f32 %v771_v50, %v706_v10 }
 0x19a   : > { %2168 = vmatmul.msk.f32.gmra.mxu0 %vm796_vm6, %v772_v3 }
 0x19b   : > { %2201 = vmatmul.msk.f32.gmra.mxu2 %vm1091_vm7, %v2462_v56  ;;  %vm1101_vm7 = vcmp.eq.s32.totalorder %v1070_v59, %v2899_v51 }
 0x19c   : > { %2190 = vmatmul.msk.f32.gmra.mxu1 %vm796_vm6, %v3221_v60  ;;  %2217 = vmatmul.msk.f32.gmra.mxu3 %vm1092_vm8, %v2462_v56  ;;  %v3307_v60 = vpop.permute.xlu2 %1402  ;;  %v3346_v12 = vpop.permute.xlu1 %1408  ;;  %vm1102_vm8 = vcmp.eq.s32.totalorder %v1070_v59, %v2906_v52 }
 0x19d   : > { %vm1448_vm12 = vcmp.eq.s32.totalorder %v3307_v60, %v2899_v51  ;;  %vm1452_vm2 = vcmp.eq.s32.totalorder %v3346_v12, %v2899_v51 }
 0x19e   : > { %v709_v55 = vpop.f32.mrf.mxu2 }
 0x19f   : > { %v774_v58 = vpop.f32.mrf.mxu3 }
 0x1a0   : > { %v775_v57 = vadd.f32 %v774_v58, %v709_v55  ;;  %v1641_v55 = vld [vmem:[%s3782_s2 + $0x68] sm:$0xff] }
 0x1a1   : > { %v3297_v7 = vpop.f32.mrf.mxu1  ;;  %1706 = vmatpush.msrb.mxu3 %v1641_v55 }
 0x1a2   : > { %2169 = vmatmul.msk.f32.gmra.mxu0 %vm796_vm6, %v775_v57 }
 0x1a3   : > { %2202 = vmatmul.msk.f32.gmra.mxu2 %vm1093_vm10, %v2462_v56 }
 0x1a4   : > { %2218 = vmatmul.msk.f32.gmra.mxu3 %vm1094_vm11, %v2462_v56  ;;  %2239 = vmatmul.msk.f32.vlgmr.msra.gmra.mxu1 %vm1446_vm9, %v2462_v56  ;;  %v1412_v27 = vpop.permute.xlu2 %1411  ;;  %vm1447_vm9 = vcmp.eq.s32.totalorder %v3295_v8, %v2906_v52  ;;  %v1415_v16 = vpop.permute.xlu1 %1414  ;;  %vm1449_vm11 = vcmp.eq.s32.totalorder %v3307_v60, %v2906_v52 }
 0x1a5   : > { %vm1454_vm5 = vcmp.eq.s32.totalorder %v1412_v27, %v2899_v51  ;;  %vm1456_vm10 = vcmp.eq.s32.totalorder %v1415_v16, %v2899_v51 }
 0x1a6   : > { %v712_v63 = vpop.f32.mrf.mxu2 }
 0x1a7   : > { %v777_v61 = vpop.f32.mrf.mxu3 }
 0x1a8   : > { %v778_v0 = vadd.f32 %v777_v61, %v712_v63 }
 0x1a9   : > { %v3309_v15 = vpop.f32.mrf.mxu1 }
 0x1aa   : > { %2170 = vmatmul.msk.f32.gmra.mxu0 %vm796_vm6, %v778_v0 }
 0x1ab   : > { %2203 = vmatmul.msk.f32.gmra.mxu2 %vm1095_vm13, %v2462_v56  ;;  %vm1451_vm13 = vcmp.eq.s32.totalorder %v3325_v24, %v2906_v52 }
 0x1ac   : > { %2219 = vmatmul.msk.f32.gmra.mxu3 %vm1096_vm14, %v2462_v56  ;;  %2240 = vmatmul.msk.f32.gmra.mxu1 %vm1448_vm12, %v2462_v56  ;;  %v1418_v39 = vpop.permute.xlu2 %1417  ;;  %vm1460_vm14 = vcmp.eq.s32.totalorder %v1421_v5, %v2899_v51  ;;  %v1424_v4 = vpop.permute.xlu1 %1423 }
 0x1ad   : > { %vm1458_vm12 = vcmp.eq.s32.totalorder %v1418_v39, %v2899_v51 }
 0x1ae   : > { %v715_v22 = vpop.f32.mrf.mxu2 }
 0x1af   : > { %v780_v29 = vpop.f32.mrf.mxu3 }
 0x1b0   : > { %v781_v31 = vadd.f32 %v780_v29, %v715_v22  ;;  %v1439_v29 = vpop.permute.xlu0 %1438 }
 0x1b1   : > { %v3333_v14 = vpop.f32.mrf.mxu1 }
 0x1b2   : > { %2171 = vmatmul.msk.f32.gmra.mxu0 %vm796_vm6, %v781_v31 }
 0x1b3   : > { %2204 = vmatmul.msk.f32.gmra.mxu2 %vm1097_vm0, %v2462_v56  ;;  %vm1462_vm0 = vcmp.eq.s32.totalorder %v1424_v4, %v2899_v51 }
 0x1b4   : > { %2220 = vmatmul.msk.f32.gmra.mxu3 %vm1098_vm1, %v2462_v56  ;;  %2241 = vmatmul.msk.f32.gmra.mxu1 %vm1450_vm15, %v2462_v56  ;;  %vm1453_vm15 = vcmp.eq.s32.totalorder %v3346_v12, %v2906_v52  ;;  %vm1455_vm1 = vcmp.eq.s32.totalorder %v1412_v27, %v2906_v52  ;;  %v1427_v49 = vpop.permute.xlu2 %1426  ;;  %v1433_v63 = vpop.permute.xlu1 %1432 }
 0x1b6   : > { %v718_v18 = vpop.f32.mrf.mxu2 }
 0x1b7   : > { %v783_v21 = vpop.f32.mrf.mxu3 }
 0x1b8   : > { %v784_v11 = vadd.f32 %v783_v21, %v718_v18 }
 0x1b9   : > { %v3350_v23 = vpop.f32.mrf.mxu1 }
 0x1ba   : > { %2172 = vmatmul.msk.f32.gmra.mxu0 %vm796_vm6, %v784_v11 }
 0x1bb   : > { %2205 = vmatmul.msk.f32.gmra.mxu2 %vm1099_vm3, %v2462_v56  ;;  %vm1457_vm3 = vcmp.eq.s32.totalorder %v1415_v16, %v2906_v52 }
 0x1bc   : > { %2221 = vmatmul.msk.f32.gmra.mxu3 %vm1100_vm4, %v2462_v56  ;;  %2242 = vmatmul.msk.f32.gmra.mxu1 %vm1452_vm2, %v2462_v56  ;;  %vm1464_vm2 = vcmp.eq.s32.totalorder %v1427_v49, %v2899_v51  ;;  %vm1466_vm4 = vcmp.eq.s32.totalorder %v1430_v53, %v2899_v51  ;;  %v1436_v20 = vpop.permute.xlu2 %1435  ;;  %v1442_v12 = vpop.permute.xlu1 %1441 }
 0x1be   : > { %v721_v25 = vpop.f32.mrf.mxu2 }
 0x1bf   : > { %v786_v19 = vpop.f32.mrf.mxu3 }
 0x1c0   : > { %v787_v30 = vadd.f32 %v786_v19, %v721_v25  ;;  %v1640_v19 = vld [vmem:[%s3782_s2 + $0x60] sm:$0xff] }
 0x1c1   : > { %v3359_v1 = vpop.f32.mrf.mxu1  ;;  %1707 = vmatpush.msrb.mxu3 %v1640_v19  ;;  %v1831_v19 = vld [vmem:[%s3784_s4 + $0xb0] sm:$0xff] }
 0x1c2   : > { %2173 = vmatmul.msk.f32.gmra.mxu0 %vm796_vm6, %v787_v30 }
 0x1c3   : > { %2206 = vmatmul.msk.f32.gmra.mxu2 %vm1101_vm7, %v2462_v56  ;;  %vm1468_vm7 = vcmp.eq.s32.totalorder %v1433_v63, %v2899_v51 }
 0x1c4   : > { %2222 = vmatmul.msk.f32.gmra.mxu3 %vm1102_vm8, %v2462_v56  ;;  %2243 = vmatmul.msk.f32.gmra.mxu1 %vm1454_vm5, %v2462_v56  ;;  %vm1459_vm5 = vcmp.eq.s32.totalorder %v1418_v39, %v2906_v52  ;;  %vm1461_vm8 = vcmp.eq.s32.totalorder %v1421_v5, %v2906_v52 }
 0x1c6   : > { %v724_v28 = vpop.f32.mrf.mxu2 }
 0x1c7   : > { %v789_v34 = vpop.f32.mrf.mxu3 }
 0x1c8   : > { %v790_v35 = vadd.f32 %v789_v34, %v724_v28  ;;  %v1445_v28 = vpop.permute.xlu2 %1444 }
 0x1c9   : > { %v3370_v37 = vpop.f32.mrf.mxu1 }
 0x1ca   : > { %2174 = vmatmul.msk.f32.gmra.mxu0 %vm796_vm6, %v790_v35 }
 0x1cb   : > { %2255 = vmatmul.msk.f32.vlgmr.msrb.gmra.mxu2 %vm1447_vm9, %v2462_v56  ;;  %vm1470_vm9 = vcmp.eq.s32.totalorder %v1436_v20, %v2899_v51 }
 0x1cc   : > { %2244 = vmatmul.msk.f32.gmra.mxu1 %vm1456_vm10, %v2462_v56  ;;  %vm1463_vm10 = vcmp.eq.s32.totalorder %v1424_v4, %v2906_v52 }
 0x1ce   : > { %v1152_v38 = vpop.f32.mrf.mxu2 }
 0x1cf   : > { %v1217_v9 = vpop.f32.mrf.mxu3  ;;  %v3430_v22 = vpop.f32.mrf.mxu0 }
 0x1d0   : > { %v1218_v2 = vadd.f32 %v1217_v9, %v1152_v38 }
 0x1d1   : > { %v3378_v6 = vpop.f32.mrf.mxu1 }
 0x1d2   : > { %2223 = vmatmul.msk.f32.vlgmr.msra.gmra.mxu0 %vm796_vm6, %v1218_v2 }
 0x1d3   : > { %2256 = vmatmul.msk.f32.gmra.mxu2 %vm1449_vm11, %v2462_v56  ;;  %vm1472_vm11 = vcmp.eq.s32.totalorder %v1439_v29, %v2899_v51 }
 0x1d4   : > { %2245 = vmatmul.msk.f32.gmra.mxu1 %vm1458_vm12, %v2462_v56  ;;  %vm1465_vm12 = vcmp.eq.s32.totalorder %v1427_v49, %v2906_v52  ;;  %v1839_v49 = vld [vmem:[%s3784_s4 + $0xf0] sm:$0xff] }
 0x1d5   : > { %1847 = vmatpush.msrb.mxu0 %v1839_v49 }
 0x1d6   : > { %v1155_v40 = vpop.f32.mrf.mxu2 }
 0x1d7   : > { %v1220_v41 = vpop.f32.mrf.mxu3  ;;  %v3440_v36 = vpop.f32.mrf.mxu0 }
 0x1d8   : > { %v1221_v32 = vadd.f32 %v1220_v41, %v1155_v40 }
 0x1d9   : > { %v3389_v43 = vpop.f32.mrf.mxu1 }
 0x1da   : > { %2224 = vmatmul.msk.f32.gmra.mxu0 %vm796_vm6, %v1221_v32 }
 0x1db   : > { %2257 = vmatmul.msk.f32.gmra.mxu2 %vm1451_vm13, %v2462_v56  ;;  %vm1474_vm13 = vcmp.eq.s32.totalorder %v1442_v12, %v2899_v51 }
 0x1dc   : > { %2246 = vmatmul.msk.f32.gmra.mxu1 %vm1460_vm14, %v2462_v56  ;;  %vm1467_vm14 = vcmp.eq.s32.totalorder %v1430_v53, %v2906_v52 }
 0x1de   : > { %v1158_v44 = vpop.f32.mrf.mxu2 }
 0x1df   : > { %v1223_v45 = vpop.f32.mrf.mxu3  ;;  %v3452_v34 = vpop.f32.mrf.mxu0 }
 0x1e0   : > { %v1224_v46 = vadd.f32 %v1223_v45, %v1158_v44 }
 0x1e1   : > { %v3394_v42 = vpop.f32.mrf.mxu1 }
 0x1e2   : > { %2225 = vmatmul.msk.f32.gmra.mxu0 %vm796_vm6, %v1224_v46 }
 0x1e3   : > { %2258 = vmatmul.msk.f32.gmra.mxu2 %vm1453_vm15, %v2462_v56  ;;  %vm1476_vm15 = vcmp.eq.s32.totalorder %v1445_v28, %v2899_v51 }
 0x1e4   : > { %2247 = vmatmul.msk.f32.gmra.mxu1 %vm1462_vm0, %v2462_v56  ;;  %vm1469_vm0 = vcmp.eq.s32.totalorder %v1433_v63, %v2906_v52 }
 0x1e6   : > { %v1161_v47 = vpop.f32.mrf.mxu2 }
 0x1e7   : > { %v1226_v48 = vpop.f32.mrf.mxu3  ;;  %v3462_v2 = vpop.f32.mrf.mxu0 }
 0x1e8   : > { %v1227_v62 = vadd.f32 %v1226_v48, %v1161_v47 }
 0x1e9   : > { %v3403_v10 = vpop.f32.mrf.mxu1 }
 0x1ea   : > { %2226 = vmatmul.msk.f32.gmra.mxu0 %vm796_vm6, %v1227_v62 }
 0x1eb   : > { %2259 = vmatmul.msk.f32.gmra.mxu2 %vm1455_vm1, %v2462_v56  ;;  %vm1471_vm1 = vcmp.eq.s32.totalorder %v1436_v20, %v2906_v52  ;;  %v1835_v20 = vld [vmem:[%s3784_s4 + $0xd0] sm:$0xff] }
 0x1ec   : > { %2248 = vmatmul.msk.f32.gmra.mxu1 %vm1464_vm2, %v2462_v56  ;;  %vm1473_vm2 = vcmp.eq.s32.totalorder %v1439_v29, %v2906_v52 }
 0x1ee   : > { %v1164_v50 = vpop.f32.mrf.mxu2 }
 0x1ef   : > { %v1229_v3 = vpop.f32.mrf.mxu3  ;;  %v3471_v5 = vpop.f32.mrf.mxu0 }
 0x1f0   : > { %v1230_v54 = vadd.f32 %v1229_v3, %v1164_v50  ;;  %v1840_v50 = vld [vmem:[%s3784_s4 + $0xf8] sm:$0xff] }
 0x1f1   : > { %v3416_v8 = vpop.f32.mrf.mxu1  ;;  %1912 = vmatpush.msrb.mxu1 %v1840_v50 }
 0x1f2   : > { %2227 = vmatmul.msk.f32.gmra.mxu0 %vm796_vm6, %v1230_v54 }
 0x1f3   : > { %2260 = vmatmul.msk.f32.gmra.mxu2 %vm1457_vm3, %v2462_v56  ;;  %vm1475_vm3 = vcmp.eq.s32.totalorder %v1442_v12, %v2906_v52 }
 0x1f4   : > { %2249 = vmatmul.msk.f32.gmra.mxu1 %vm1466_vm4, %v2462_v56  ;;  %vm1477_vm4 = vcmp.eq.s32.totalorder %v1445_v28, %v2906_v52 }
 0x1f6   : > { %v1167_v58 = vpop.f32.mrf.mxu2 }
 0x1f7   : > { %v1232_v57 = vpop.f32.mrf.mxu3  ;;  %v3476_v4 = vpop.f32.mrf.mxu0 }
 0x1f8   : > { %v1233_v59 = vadd.f32 %v1232_v57, %v1167_v58  ;;  %v1837_v57 = vld [vmem:[%s3784_s4 + $0xe0] sm:$0xff] }
 0x1f9   : > { %v3424_v60 = vpop.f32.mrf.mxu1  ;;  %1848 = vmatpush.msrb.mxu0 %v1837_v57 }
 0x1fa   : > { %2228 = vmatmul.msk.f32.gmra.mxu0 %vm796_vm6, %v1233_v59  ;;  %v1838_v59 = vld [vmem:[%s3784_s4 + $0xe8] sm:$0xff] }
 0x1fb   : > { %2261 = vmatmul.msk.f32.gmra.mxu2 %vm1459_vm5, %v2462_v56  ;;  %1913 = vmatpush.msrb.mxu1 %v1838_v59 }
 0x1fc   : > { %2250 = vmatmul.msk.f32.gmra.mxu1 %vm1468_vm7, %v2462_v56  ;;  %1849 = vmatpush.msrb.mxu0 %v1835_v20 }
 0x1fe   : > { %v1170_v61 = vpop.f32.mrf.mxu2 }
 0x1ff   : > { %v1235_v0 = vpop.f32.mrf.mxu3  ;;  %v3487_v55 = vpop.f32.mrf.mxu0 }
 0x200   : > { %v1236_v17 = vadd.f32 %v1235_v0, %v1170_v61 }
 0x201   : > { %v3433_v31 = vpop.f32.mrf.mxu1 }
 0x202   : > { %2229 = vmatmul.msk.f32.gmra.mxu0 %vm796_vm6, %v1236_v17 }
 0x203   : > { %2262 = vmatmul.msk.f32.gmra.mxu2 %vm1461_vm8, %v2462_v56 }
 0x204   : > { %2251 = vmatmul.msk.f32.gmra.mxu1 %vm1470_vm9, %v2462_v56 }
 0x206   : > { %v1173_v24 = vpop.f32.mrf.mxu2 }
 0x207   : > { %v1238_v26 = vpop.f32.mrf.mxu3 }
 0x208   : > { %v1239_v33 = vadd.f32 %v1238_v26, %v1173_v24  ;;  %v1836_v24 = vld [vmem:[%s3784_s4 + $0xd8] sm:$0xff]  ;;  %v3504_v26 = vpop.f32.mrf.mxu0 }
 0x209   : > { %v3443_v25 = vpop.f32.mrf.mxu1  ;;  %1914 = vmatpush.msrb.mxu1 %v1836_v24 }
 0x20a   : > { %2230 = vmatmul.msk.f32.gmra.mxu0 %vm796_vm6, %v1239_v33  ;;  %v1833_v33 = vld [vmem:[%s3784_s4 + $0xc0] sm:$0xff] }
 0x20b   : > { %2263 = vmatmul.msk.f32.gmra.mxu2 %vm1463_vm10, %v2462_v56  ;;  %1850 = vmatpush.msrb.mxu0 %v1833_v33 }
 0x20c   : > { %2252 = vmatmul.msk.f32.gmra.mxu1 %vm1472_vm11, %v2462_v56 }
 0x20d   : > { %1851 = vmatpush.msrb.mxu0 %v1831_v19 }
 0x20e   : > { %v1176_v18 = vpop.f32.mrf.mxu2 }
 0x20f   : > { %v1241_v21 = vpop.f32.mrf.mxu3 }
 0x210   : > { %v1242_v11 = vadd.f32 %v1241_v21, %v1176_v18  ;;  %v1834_v18 = vld [vmem:[%s3784_s4 + $0xc8] sm:$0xff] }
 0x211   : > { %v3458_v35 = vpop.f32.mrf.mxu1  ;;  %1915 = vmatpush.msrb.mxu1 %v1834_v18 }
 0x212   : > { %2231 = vmatmul.msk.f32.gmra.mxu0 %vm796_vm6, %v1242_v11 }
 0x213   : > { %2264 = vmatmul.msk.f32.gmra.mxu2 %vm1465_vm12, %v2462_v56 }
 0x214   : > { %2253 = vmatmul.msk.f32.gmra.mxu1 %vm1474_vm13, %v2462_v56 }
 0x216   : > { %v1179_v27 = vpop.f32.mrf.mxu2 }
 0x217   : > { %v1244_v30 = vpop.f32.mrf.mxu3 }
 0x218   : > { %v1245_v16 = vadd.f32 %v1244_v30, %v1179_v27  ;;  %v1832_v27 = vld [vmem:[%s3784_s4 + $0xb8] sm:$0xff] }
 0x219   : > { %v3466_v13 = vpop.f32.mrf.mxu1  ;;  %1916 = vmatpush.msrb.mxu1 %v1832_v27 }
 0x21a   : > { %2232 = vmatmul.msk.f32.gmra.mxu0 %vm796_vm6, %v1245_v16  ;;  %v3521_v16 = vpop.f32.mrf.mxu0 }
 0x21b   : > { %2265 = vmatmul.msk.f32.gmra.mxu2 %vm1467_vm14, %v2462_v56 }
 0x21c   : > { %2254 = vmatmul.msk.f32.gmra.mxu1 %vm1476_vm15, %v2462_v56 }
 0x21e   : > { %v1182_v38 = vpop.f32.mrf.mxu2 }
 0x21f   : > { %v1247_v9 = vpop.f32.mrf.mxu3 }
 0x220   : > { %v1248_v39 = vadd.f32 %v1247_v9, %v1182_v38  ;;  %v1829_v38 = vld [vmem:[%s3784_s4 + $0xa0] sm:$0xff]  ;;  %v1830_v9 = vld [vmem:[%s3784_s4 + $0xa8] sm:$0xff] }
 0x221   : > { %v1527_v45 = vpop.f32.mrf.mxu1  ;;  %1852 = vmatpush.msrb.mxu0 %v1829_v38  ;;  %1917 = vmatpush.msrb.mxu1 %v1830_v9  ;;  %v1815_v38 = vld [vmem:[%s3784_s4 + $0x30] sm:$0xff]  ;;  %v1816_v9 = vld [vmem:[%s3784_s4 + $0x38] sm:$0xff] }
 0x222   : > { %2233 = vmatmul.msk.f32.gmra.mxu0 %vm796_vm6, %v1248_v39 }
 0x223   : > { %2266 = vmatmul.msk.f32.gmra.mxu2 %vm1469_vm0, %v2462_v56 }
 0x226   : > { %v1185_v51 = vpop.f32.mrf.mxu2 }
 0x227   : > { %v1250_v40 = vpop.f32.mrf.mxu3 }
 0x228   : > { %v1251_v41 = vadd.f32 %v1250_v40, %v1185_v51 }
 0x229   : > { %v1530_v3 = vpop.f32.mrf.mxu1 }
 0x22a   : > { %2234 = vmatmul.msk.f32.gmra.mxu0 %vm796_vm6, %v1251_v41  ;;  %v1827_v41 = vld [vmem:[%s3784_s4 + $0x90] sm:$0xff] }
 0x22b   : > { %2267 = vmatmul.msk.f32.gmra.mxu2 %vm1471_vm1, %v2462_v56  ;;  %1853 = vmatpush.msrb.mxu0 %v1827_v41 }
 0x22e   : > { %v1188_v32 = vpop.f32.mrf.mxu2 }
 0x22f   : > { %v1253_v44 = vpop.f32.mrf.mxu3 }
 0x230   : > { %v1254_v46 = vadd.f32 %v1253_v44, %v1188_v32  ;;  %v1828_v32 = vld [vmem:[%s3784_s4 + $0x98] sm:$0xff]  ;;  %v3537_v44 = vpop.f32.mrf.mxu0 }
 0x231   : > { %v1533_v63 = vpop.f32.mrf.mxu1  ;;  %1918 = vmatpush.msrb.mxu1 %v1828_v32  ;;  %v1813_v32 = vld [vmem:[%s3784_s4 + $0x20] sm:$0xff] }
 0x232   : > { %2235 = vmatmul.msk.f32.gmra.mxu0 %vm796_vm6, %v1254_v46 }
 0x233   : > { %2268 = vmatmul.msk.f32.gmra.mxu2 %vm1473_vm2, %v2462_v56 }
 0x236   : > { %v1191_v47 = vpop.f32.mrf.mxu2 }
 0x237   : > { %v1256_v48 = vpop.f32.mrf.mxu3 }
 0x238   : > { %v1257_v62 = vadd.f32 %v1256_v48, %v1191_v47  ;;  %v1825_v48 = vld [vmem:[%s3784_s4 + $0x80] sm:$0xff]  ;;  %v3546_v49 = vpop.f32.mrf.mxu0 }
 0x239   : > { %v1536_v52 = vpop.f32.mrf.mxu1  ;;  %1854 = vmatpush.msrb.mxu0 %v1825_v48 }
 0x23a   : > { %2236 = vmatmul.msk.f32.gmra.mxu0 %vm796_vm6, %v1257_v62  ;;  %v1826_v62 = vld [vmem:[%s3784_s4 + $0x88] sm:$0xff] }
 0x23b   : > { %2269 = vmatmul.msk.f32.gmra.mxu2 %vm1475_vm3, %v2462_v56  ;;  %1919 = vmatpush.msrb.mxu1 %v1826_v62 }
 0x23e   : > { %v1194_v54 = vpop.f32.mrf.mxu2 }
 0x23f   : > { %v1259_v53 = vpop.f32.mrf.mxu3 }
 0x240   : > { %v1260_v58 = vadd.f32 %v1259_v53, %v1194_v54  ;;  %v1823_v53 = vld [vmem:[%s3784_s4 + $0x70] sm:$0xff]  ;;  %v3555_v59 = vpop.f32.mrf.mxu0 }
 0x241   : > { %v1539_v11 = vpop.f32.mrf.mxu1  ;;  %1855 = vmatpush.msrb.mxu0 %v1823_v53  ;;  %v1810_v53 = vld [vmem:[%s3784_s4 + $0x8] sm:$0xff] }
 0x242   : > { %2237 = vmatmul.msk.f32.gmra.mxu0 %vm796_vm6, %v1260_v58  ;;  %v1824_v58 = vld [vmem:[%s3784_s4 + $0x78] sm:$0xff] }
 0x243   : > { %2270 = vmatmul.msk.f32.gmra.mxu2 %vm1477_vm4, %v2462_v56  ;;  %1920 = vmatpush.msrb.mxu1 %v1824_v58 }
 0x246   : > { %v1197_v61 = vpop.f32.mrf.mxu2 }
 0x247   : > { %v1262_v0 = vpop.f32.mrf.mxu3 }
 0x248   : > { %v1263_v17 = vadd.f32 %v1262_v0, %v1197_v61  ;;  %v1821_v0 = vld [vmem:[%s3784_s4 + $0x60] sm:$0xff] }
 0x249   : > { %v1542_v39 = vpop.f32.mrf.mxu1  ;;  %1856 = vmatpush.msrb.mxu0 %v1821_v0 }
 0x24a   : > { %2238 = vmatmul.msk.f32.gmra.mxu0 %vm796_vm6, %v1263_v17  ;;  %v1822_v17 = vld [vmem:[%s3784_s4 + $0x68] sm:$0xff] }
 0x24b   : > { %1921 = vmatpush.msrb.mxu1 %v1822_v17 }
 0x24e   : > { %v1592_v56 = vpop.f32.mrf.mxu2 }
 0x24f   : > { %v1593_v29 = vadd.f32 %v1592_v56, %v1527_v45  ;;  %v1819_v56 = vld [vmem:[%s3784_s4 + $0x50] sm:$0xff] }
 0x250   : > { %1857 = vmatpush.msrb.mxu0 %v1819_v56 }
 0x251   : > { %2271 = vmatmul.msk.f32.vlgmr.msrb.gmra.mxu3 %vm796_vm6, %v1593_v29  ;;  %v1545_v45 = vpop.f32.mrf.mxu1  ;;  %v1820_v29 = vld [vmem:[%s3784_s4 + $0x58] sm:$0xff] }
 0x252   : > { %1922 = vmatpush.msrb.mxu1 %v1820_v29 }
 0x256   : > { %v1595_v21 = vpop.f32.mrf.mxu2 }
 0x257   : > { %v1596_v12 = vadd.f32 %v1595_v21, %v1530_v3 }
 0x259   : > { %2272 = vmatmul.msk.f32.gmra.mxu3 %vm796_vm6, %v1596_v12  ;;  %v1548_v50 = vpop.f32.mrf.mxu1  ;;  %v1817_v12 = vld [vmem:[%s3784_s4 + $0x40] sm:$0xff] }
 0x25a   : > { %1858 = vmatpush.msrb.mxu0 %v1817_v12 }
 0x25c   : > { %1859 = vmatpush.msrb.mxu0 %v1815_v38 }
 0x25e   : > { %v1598_v30 = vpop.f32.mrf.mxu2  ;;  %1860 = vmatpush.msrb.mxu0 %v1813_v32 }
 0x25f   : > { %v1599_v28 = vadd.f32 %v1598_v30, %v1533_v63 }
 0x261   : > { %2273 = vmatmul.msk.f32.gmra.mxu3 %vm796_vm6, %v1599_v28  ;;  %v1551_v61 = vpop.f32.mrf.mxu1 }
 0x266   : > { %v1601_v51 = vpop.f32.mrf.mxu2 }
 0x267   : > { %v1602_v40 = vadd.f32 %v1601_v51, %v1536_v52  ;;  %v3564_v52 = vpop.f32.mrf.mxu0 }
 0x269   : > { %2274 = vmatmul.msk.f32.gmra.mxu3 %vm796_vm6, %v1602_v40  ;;  %v1554_v33 = vpop.f32.mrf.mxu1 }
 0x26e   : > { %v1604_v46 = vpop.f32.mrf.mxu2 }
 0x26f   : > { %v1605_v47 = vadd.f32 %v1604_v46, %v1539_v11  ;;  %v1818_v11 = vld [vmem:[%s3784_s4 + $0x48] sm:$0xff]  ;;  %v3580_v19 = vpop.f32.mrf.mxu0 }
 0x270   : > { %1923 = vmatpush.msrb.mxu1 %v1818_v11 }
 0x271   : > { %2275 = vmatmul.msk.f32.gmra.mxu3 %vm796_vm6, %v1605_v47  ;;  %v1557_v27 = vpop.f32.mrf.mxu1 }
 0x272   : > { %1924 = vmatpush.msrb.mxu1 %v1816_v9 }
 0x276   : > { %v1607_v3 = vpop.f32.mrf.mxu2 }
 0x277   : > { %v1608_v54 = vadd.f32 %v1607_v3, %v1542_v39  ;;  %v3589_v39 = vpop.f32.mrf.mxu0  ;;  %v1812_v3 = vld [vmem:[%s3784_s4 + $0x18] sm:$0xff] }
 0x279   : > { %2276 = vmatmul.msk.f32.gmra.mxu3 %vm796_vm6, %v1608_v54  ;;  %v1560_v51 = vpop.f32.mrf.mxu1  ;;  %v1809_v54 = vld [vmem:[%s3784_s4] sm:$0xff] }
 0x27e   : > { %v1610_v57 = vpop.f32.mrf.mxu2 }
 0x27f   : > { %v1611_v63 = vadd.f32 %v1610_v57, %v1545_v45  ;;  %v1814_v45 = vld [vmem:[%s3784_s4 + $0x28] sm:$0xff]  ;;  %v3598_v47 = vpop.f32.mrf.mxu0 }
 0x280   : > { %1925 = vmatpush.msrb.mxu1 %v1814_v45 }
 0x281   : > { %2277 = vmatmul.msk.f32.gmra.mxu3 %vm796_vm6, %v1611_v63  ;;  %v1563_v62 = vpop.f32.mrf.mxu1 }
 0x282   : > { %1926 = vmatpush.msrb.mxu1 %v1812_v3 }
 0x284   : > { %1927 = vmatpush.msrb.mxu1 %v1810_v53 }
 0x286   : > { %v1613_v20 = vpop.f32.mrf.mxu2 }
 0x287   : > { %v1614_v24 = vadd.f32 %v1613_v20, %v1548_v50  ;;  %v1811_v50 = vld [vmem:[%s3784_s4 + $0x10] sm:$0xff]  ;;  %v1334_v63 = vpop.f32.mrf.mxu0 }
 0x288   : > { %1861 = vmatpush.msrb.mxu0 %v1811_v50 }
 0x289   : > { %2278 = vmatmul.msk.f32.gmra.mxu3 %vm796_vm6, %v1614_v24 }
 0x28a   : > { %1862 = vmatpush.msrb.mxu0 %v1809_v54 }
 0x28e   : > { %v1616_v18 = vpop.f32.mrf.mxu2 }
 0x28f   : > { %v1617_v21 = vadd.f32 %v1616_v18, %v1551_v61  ;;  %v1566_v61 = vpop.f32.mrf.mxu1  ;;  %v1337_v20 = vpop.f32.mrf.mxu0 }
 0x291   : > { %2279 = vmatmul.msk.f32.gmra.mxu3 %vm796_vm6, %v1617_v21 }
 0x296   : > { %v1619_v30 = vpop.f32.mrf.mxu2 }
 0x297   : > { %v1620_v28 = vadd.f32 %v1619_v30, %v1554_v33  ;;  %v1569_v24 = vpop.f32.mrf.mxu1  ;;  %v1340_v33 = vpop.f32.mrf.mxu0 }
 0x299   : > { %2280 = vmatmul.msk.f32.gmra.mxu3 %vm796_vm6, %v1620_v28  ;;  %v3622_v28 = vld [vmem:[%s3783_s3] ss:$0 sm:$0xff] }
 0x29e   : > { %v1622_v40 = vpop.f32.mrf.mxu2 }
 0x29f   : > { %v1623_v41 = vadd.f32 %v1622_v40, %v1557_v27  ;;  %v1572_v18 = vpop.f32.mrf.mxu1  ;;  %v1343_v11 = vpop.f32.mrf.mxu0  ;;  %v976_v27 = vadd.f32 %v3297_v7, %v3430_v22  ;;  %v979_v40 = vadd.f32 %v3309_v15, %v3440_v36  ;;  %v985_v36 = vadd.f32 %v3350_v23, %v3462_v2 }
 0x2a1   : > { %2281 = vmatmul.msk.f32.gmra.mxu3 %vm796_vm6, %v1623_v41  ;;  %v1382_v30 = vadd.f32 %v1334_v63, %v976_v27  ;;  %v1383_v45 = vadd.f32 %v1337_v20, %v979_v40 }
 0x2a6   : > { %v1625_v46 = vpop.f32.mrf.mxu2 }
 0x2a7   : > { %v1626_v48 = vadd.f32 %v1625_v46, %v1560_v51  ;;  %v1346_v32 = vpop.f32.mrf.mxu0 }
 0x2a9   : > { %2282 = vmatmul.msk.f32.gmra.mxu3 %vm796_vm6, %v1626_v48  ;;  %v982_v48 = vadd.f32 %v3333_v14, %v3452_v34  ;;  %v988_v34 = vadd.f32 %v3359_v1, %v3471_v5  ;;  %v994_v5 = vadd.f32 %v3378_v6, %v3487_v55  ;;  %v1000_v55 = vadd.f32 %v3394_v42, %v3521_v16 }
 0x2ab   : > { %v1384_v50 = vadd.f32 %v1340_v33, %v982_v48  ;;  %v1386_v20 = vadd.f32 %v1346_v32, %v988_v34 }
 0x2ae   : > { %v1628_v58 = vpop.f32.mrf.mxu2 }
 0x2af   : > { %v1629_v57 = vadd.f32 %v1628_v58, %v1563_v62  ;;  %v1349_v3 = vpop.f32.mrf.mxu0 }
 0x2b1   : > { %2283 = vmatmul.msk.f32.gmra.mxu3 %vm796_vm6, %v1629_v57  ;;  %v1385_v57 = vadd.f32 %v1343_v11, %v985_v36 }
 0x2b6   : > { %v1631_v0 = vpop.f32.mrf.mxu2 }
 0x2b7   : > { %v1632_v17 = vadd.f32 %v1631_v0, %v1566_v61  ;;  %v1352_v0 = vpop.f32.mrf.mxu0 }
 0x2b9   : > { %2284 = vmatmul.msk.f32.gmra.mxu3 %vm796_vm6, %v1632_v17 }
 0x2be   : > { %v1634_v56 = vpop.f32.mrf.mxu2 }
 0x2bf   : > { %v1635_v29 = vadd.f32 %v1634_v56, %v1569_v24  ;;  %v1355_v2 = vpop.f32.mrf.mxu0 }
 0x2c1   : > { %2285 = vmatmul.msk.f32.gmra.mxu3 %vm796_vm6, %v1635_v29  ;;  %v991_v29 = vadd.f32 %v3370_v37, %v3476_v4  ;;  %v997_v4 = vadd.f32 %v3389_v43, %v3504_v26  ;;  %v1003_v26 = vadd.f32 %v3403_v10, %v3537_v44  ;;  %v1009_v44 = vadd.f32 %v3424_v60, %v3555_v59 }
 0x2c2   : > { %v1015_v59 = vadd.f32 %v3443_v25, %v3580_v19 }
 0x2c3   : > { %v1389_v40 = vadd.f32 %v1355_v2, %v997_v4 }
 0x2c6   : > { %v1637_v21 = vpop.f32.mrf.mxu2 }
 0x2c7   : > { %v1638_v12 = vadd.f32 %v1637_v21, %v1572_v18  ;;  %v1387_v18 = vadd.f32 %v1349_v3, %v991_v29  ;;  %v1358_v27 = vpop.f32.mrf.mxu0 }
 0x2c9   : > { %2286 = vmatmul.msk.f32.gmra.mxu3 %vm796_vm6, %v1638_v12 }
 0x2d4   : > { %v1709_v38 = vpop.f32.mrf.mxu3 }
 0x2d5   : > { %v1757_v9 = vadd.f32 %v1709_v38, %v1382_v30  ;;  %v1388_v30 = vadd.f32 %v1352_v0, %v994_v5 }
 0x2d7   : > { %v1777_v51 = vadd.f32 %v3622_v28, %v1757_v9 }
 0x2d9   : > { %v1793_v41 = vmax.f32 %v1777_v51, 0.0 }
 0x2db   : > { %1863 = vmatmul.f32.vlgmr.msrb.gmra.mxu0 %v1793_v41  ;;  %1928 = vmatmul.f32.vlgmr.msrb.gmra.mxu1 %v1793_v41  ;;  %v1361_v41 = vpop.f32.mrf.mxu0 }
 0x2dc   : > { %v1712_v46 = vpop.f32.mrf.mxu3  ;;  %v1391_v3 = vadd.f32 %v1361_v41, %v1003_v26 }
 0x2dd   : > { %v1758_v7 = vadd.f32 %v1712_v46, %v1383_v45 }
 0x2df   : > { %v1778_v22 = vadd.f32 %v3622_v28, %v1758_v7  ;;  %v1390_v7 = vadd.f32 %v1358_v27, %v1000_v55 }
 0x2e1   : > { %v1794_v62 = vmax.f32 %v1778_v22, 0.0 }
 0x2e3   : > { %1866 = vmatmul.f32.gmra.mxu0 %v1794_v62  ;;  %1931 = vmatmul.f32.gmra.mxu1 %v1794_v62  ;;  %v1364_v62 = vpop.f32.mrf.mxu0 }
 0x2e4   : > { %v1715_v54 = vpop.f32.mrf.mxu3 }
 0x2e5   : > { %v1759_v53 = vadd.f32 %v1715_v54, %v1384_v50 }
 0x2e7   : > { %v1779_v15 = vadd.f32 %v3622_v28, %v1759_v53 }
 0x2e9   : > { %v1795_v58 = vmax.f32 %v1779_v15, 0.0  ;;  %v1006_v15 = vadd.f32 %v3416_v8, %v3546_v49  ;;  %v1012_v49 = vadd.f32 %v3433_v31, %v3564_v52  ;;  %v1018_v52 = vadd.f32 %v3458_v35, %v3589_v39 }
 0x2eb   : > { %1869 = vmatmul.f32.gmra.mxu0 %v1795_v58  ;;  %1934 = vmatmul.f32.gmra.mxu1 %v1795_v58  ;;  %v1367_v16 = vpop.f32.mrf.mxu0  ;;  %v1392_v58 = vadd.f32 %v1364_v62, %v1006_v15 }
 0x2ec   : > { %v1718_v63 = vpop.f32.mrf.mxu3 }
 0x2ed   : > { %v1760_v61 = vadd.f32 %v1718_v63, %v1385_v57 }
 0x2ef   : > { %v1780_v14 = vadd.f32 %v3622_v28, %v1760_v61 }
 0x2f1   : > { %v1796_v17 = vmax.f32 %v1780_v14, 0.0  ;;  %v1393_v14 = vadd.f32 %v1367_v16, %v1009_v44 }
 0x2f3   : > { %1872 = vmatmul.f32.gmra.mxu0 %v1796_v17  ;;  %1937 = vmatmul.f32.gmra.mxu1 %v1796_v17  ;;  %v1370_v0 = vpop.f32.mrf.mxu0 }
 0x2f4   : > { %v1721_v24 = vpop.f32.mrf.mxu3 }
 0x2f5   : > { %v1761_v56 = vadd.f32 %v1721_v24, %v1386_v20  ;;  %v1394_v24 = vadd.f32 %v1370_v0, %v1012_v49 }
 0x2f7   : > { %v1781_v23 = vadd.f32 %v3622_v28, %v1761_v56 }
 0x2f9   : > { %v1797_v33 = vmax.f32 %v1781_v23, 0.0 }
 0x2fb   : > { %1875 = vmatmul.f32.gmra.mxu0 %v1797_v33  ;;  %1940 = vmatmul.f32.gmra.mxu1 %v1797_v33  ;;  %v1373_v56 = vpop.f32.mrf.mxu0 }
 0x2fc   : > { %v1724_v21 = vpop.f32.mrf.mxu3  ;;  %v1395_v33 = vadd.f32 %v1373_v56, %v1015_v59 }
 0x2fd   : > { %v1762_v12 = vadd.f32 %v1724_v21, %v1387_v18 }
 0x2ff   : > { %v1782_v1 = vadd.f32 %v3622_v28, %v1762_v12 }
 0x301   : > { %v1798_v11 = vmax.f32 %v1782_v1, 0.0 }
 0x303   : > { %1878 = vmatmul.f32.gmra.mxu0 %v1798_v11  ;;  %1943 = vmatmul.f32.gmra.mxu1 %v1798_v11  ;;  %v1376_v12 = vpop.f32.mrf.mxu0 }
 0x304   : > { %v1727_v38 = vpop.f32.mrf.mxu3  ;;  %v1396_v5 = vadd.f32 %v1376_v12, %v1018_v52 }
 0x305   : > { %v1763_v9 = vadd.f32 %v1727_v38, %v1388_v30  ;;  %v1021_v30 = vadd.f32 %v3466_v13, %v3598_v47 }
 0x307   : > { %v1783_v37 = vadd.f32 %v3622_v28, %v1763_v9 }
 0x309   : > { %v1799_v51 = vmax.f32 %v1783_v37, 0.0 }
 0x30b   : > { %1881 = vmatmul.f32.gmra.mxu0 %v1799_v51  ;;  %1946 = vmatmul.f32.gmra.mxu1 %v1799_v51  ;;  %v1379_v19 = vpop.f32.mrf.mxu0  ;;  %v1841_v51 = vld [vmem:[%s3785_s5] sm:$0x3] }
 0x30c   : > { %v1730_v32 = vpop.f32.mrf.mxu3  ;;  %v1397_v9 = vadd.f32 %v1379_v19, %v1021_v30  ;;  %v3678_v13 = vperm.slane %v1841_v51, 1 }
 0x30d   : > { %v1764_v45 = vadd.f32 %v1730_v32, %v1389_v40  ;;  %v3676_v40 = vperm.slane %v1841_v51, 0 }
 0x30f   : > { %v1784_v6 = vadd.f32 %v3622_v28, %v1764_v45 }
 0x311   : > { %v1800_v46 = vmax.f32 %v1784_v6, 0.0 }
 0x313   : > { %1884 = vmatmul.f32.gmra.mxu0 %v1800_v46  ;;  %1949 = vmatmul.f32.gmra.mxu1 %v1800_v46 }
 0x314   : > { %v1733_v22 = vpop.f32.mrf.mxu3 }
 0x315   : > { %v1765_v48 = vadd.f32 %v1733_v22, %v1390_v7 }
 0x317   : > { %v1785_v43 = vadd.f32 %v3622_v28, %v1765_v48 }
 0x319   : > { %v1801_v50 = vmax.f32 %v1785_v43, 0.0 }
 0x31b   : > { %1887 = vmatmul.f32.gmra.mxu0 %v1801_v50  ;;  %1952 = vmatmul.f32.gmra.mxu1 %v1801_v50 }
 0x31c   : > { %v1736_v54 = vpop.f32.mrf.mxu3 }
 0x31d   : > { %v1766_v53 = vadd.f32 %v1736_v54, %v1391_v3 }
 0x31f   : > { %v1786_v42 = vadd.f32 %v3622_v28, %v1766_v53 }
 0x321   : > { %v1802_v36 = vmax.f32 %v1786_v42, 0.0 }
 0x323   : > { %1890 = vmatmul.f32.gmra.mxu0 %v1802_v36  ;;  %1955 = vmatmul.f32.gmra.mxu1 %v1802_v36 }
 0x324   : > { %v1739_v57 = vpop.f32.mrf.mxu3 }
 0x325   : > { %v1767_v63 = vadd.f32 %v1739_v57, %v1392_v58 }
 0x327   : > { %v1787_v10 = vadd.f32 %v3622_v28, %v1767_v63 }
 0x329   : > { %v1803_v61 = vmax.f32 %v1787_v10, 0.0 }
 0x32b   : > { %1893 = vmatmul.f32.gmra.mxu0 %v1803_v61  ;;  %1958 = vmatmul.f32.gmra.mxu1 %v1803_v61 }
 0x32c   : > { %v1742_v34 = vpop.f32.mrf.mxu3 }
 0x32d   : > { %v1768_v17 = vadd.f32 %v1742_v34, %v1393_v14 }
 0x32f   : > { %v1788_v8 = vadd.f32 %v3622_v28, %v1768_v17 }
 0x331   : > { %v1804_v20 = vmax.f32 %v1788_v8, 0.0 }
 0x333   : > { %1896 = vmatmul.f32.gmra.mxu0 %v1804_v20  ;;  %1961 = vmatmul.f32.gmra.mxu1 %v1804_v20 }
 0x334   : > { %v1745_v23 = vpop.f32.mrf.mxu3 }
 0x335   : > { %v1769_v2 = vadd.f32 %v1745_v23, %v1394_v24 }
 0x337   : > { %v1789_v60 = vadd.f32 %v3622_v28, %v1769_v2 }
 0x339   : > { %v1805_v29 = vmax.f32 %v1789_v60, 0.0 }
 0x33b   : > { %1899 = vmatmul.f32.gmra.mxu0 %v1805_v29  ;;  %1964 = vmatmul.f32.gmra.mxu1 %v1805_v29 }
 0x33c   : > { %v1748_v18 = vpop.f32.mrf.mxu3 }
 0x33d   : > { %v1770_v21 = vadd.f32 %v1748_v18, %v1395_v33 }
 0x33f   : > { %v1790_v31 = vadd.f32 %v3622_v28, %v1770_v21 }
 0x341   : > { %v1806_v1 = vmax.f32 %v1790_v31, 0.0 }
 0x343   : > { %1902 = vmatmul.f32.gmra.mxu0 %v1806_v1  ;;  %1967 = vmatmul.f32.gmra.mxu1 %v1806_v1 }
 0x344   : > { %v1751_v11 = vpop.f32.mrf.mxu3 }
 0x345   : > { %v1771_v27 = vadd.f32 %v1751_v11, %v1396_v5 }
 0x347   : > { %v1791_v25 = vadd.f32 %v3622_v28, %v1771_v27 }
 0x349   : > { %v1807_v38 = vmax.f32 %v1791_v25, 0.0 }
 0x34b   : > { %1905 = vmatmul.f32.gmra.mxu0 %v1807_v38  ;;  %1970 = vmatmul.f32.gmra.mxu1 %v1807_v38 }
 0x34c   : > { %v1754_v37 = vpop.f32.mrf.mxu3 }
 0x34d   : > { %v1772_v35 = vadd.f32 %v1754_v37, %v1397_v9 }
 0x34f   : > { %v1792_v39 = vadd.f32 %v3622_v28, %v1772_v35 }
 0x351   : > { %v1808_v4 = vmax.f32 %v1792_v39, 0.0 }
 0x353   : > { %1908 = vmatmul.f32.gmra.mxu0 %v1808_v4  ;;  %1973 = vmatmul.f32.gmra.mxu1 %v1808_v4 }
 0x358   : > { %v1864_v47 = vpop.f32.mrf.mxu0  ;;  %v1929_v41 = vpop.f32.mrf.mxu1 }
 0x359   : > { %v1865_v32 = vadd.f32 %v1864_v47, %v3676_v40  ;;  %v1930_v28 = vadd.f32 %v1929_v41, %v3678_v13 }
 0x35b   : > { %1977 = vst [vmem:[%s3682_s13] sm:$0xff] %v1865_v32 }
 0x35c   : > { %1978 = vst [vmem:[%s3682_s13 + $0x8] sm:$0xff] %v1930_v28 }
 0x360   : > { %v1867_v45 = vpop.f32.mrf.mxu0  ;;  %v1932_v6 = vpop.f32.mrf.mxu1 }
 0x361   : > { %v1868_v55 = vadd.f32 %v1867_v45, %v3676_v40  ;;  %v1933_v46 = vadd.f32 %v1932_v6, %v3678_v13 }
 0x363   : > { %1979 = vst [vmem:[%s3682_s13 + $0x10] sm:$0xff] %v1868_v55 }
 0x364   : > { %1980 = vst [vmem:[%s3682_s13 + $0x18] sm:$0xff] %v1933_v46 }
 0x368   : > { %v1870_v7 = vpop.f32.mrf.mxu0  ;;  %v1935_v22 = vpop.f32.mrf.mxu1 }
 0x369   : > { %v1871_v48 = vadd.f32 %v1870_v7, %v3676_v40  ;;  %v1936_v62 = vadd.f32 %v1935_v22, %v3678_v13 }
 0x36b   : > { %1981 = vst [vmem:[%s3682_s13 + $0x20] sm:$0xff] %v1871_v48 }
 0x36c   : > { %1982 = vst [vmem:[%s3682_s13 + $0x28] sm:$0xff] %v1936_v62 }
 0x370   : > { %v1873_v43 = vpop.f32.mrf.mxu0  ;;  %v1938_v26 = vpop.f32.mrf.mxu1 }
 0x371   : > { %v1874_v50 = vadd.f32 %v1873_v43, %v3676_v40  ;;  %v1939_v3 = vadd.f32 %v1938_v26, %v3678_v13 }
 0x373   : > { %1983 = vst [vmem:[%s3682_s13 + $0x30] sm:$0xff] %v1874_v50 }
 0x374   : > { %1984 = vst [vmem:[%s3682_s13 + $0x38] sm:$0xff] %v1939_v3 }
 0x378   : > { %v1876_v54 = vpop.f32.mrf.mxu0  ;;  %v1941_v53 = vpop.f32.mrf.mxu1 }
 0x379   : > { %v1877_v42 = vadd.f32 %v1876_v54, %v3676_v40  ;;  %v1942_v16 = vadd.f32 %v1941_v53, %v3678_v13 }
 0x37b   : > { %1985 = vst [vmem:[%s3682_s13 + $0x40] sm:$0xff] %v1877_v42 }
 0x37c   : > { %1986 = vst [vmem:[%s3682_s13 + $0x48] sm:$0xff] %v1942_v16 }
 0x380   : > { %v1879_v15 = vpop.f32.mrf.mxu0  ;;  %v1944_v36 = vpop.f32.mrf.mxu1 }
 0x381   : > { %v1880_v58 = vadd.f32 %v1879_v15, %v3676_v40  ;;  %v1945_v57 = vadd.f32 %v1944_v36, %v3678_v13 }
 0x383   : > { %1987 = vst [vmem:[%s3682_s13 + $0x50] sm:$0xff] %v1880_v58 }
 0x384   : > { %1988 = vst [vmem:[%s3682_s13 + $0x58] sm:$0xff] %v1945_v57 }
 0x388   : > { %v1882_v63 = vpop.f32.mrf.mxu0  ;;  %v1947_v10 = vpop.f32.mrf.mxu1 }
 0x389   : > { %v1883_v44 = vadd.f32 %v1882_v63, %v3676_v40  ;;  %v1948_v61 = vadd.f32 %v1947_v10, %v3678_v13 }
 0x38b   : > { %1989 = vst [vmem:[%s3682_s13 + $0x60] sm:$0xff] %v1883_v44 }
 0x38c   : > { %1990 = vst [vmem:[%s3682_s13 + $0x68] sm:$0xff] %v1948_v61 }
 0x390   : > { %v1885_v0 = vpop.f32.mrf.mxu0  ;;  %v1950_v14 = vpop.f32.mrf.mxu1 }
 0x391   : > { %v1886_v34 = vadd.f32 %v1885_v0, %v3676_v40  ;;  %v1951_v17 = vadd.f32 %v1950_v14, %v3678_v13 }
 0x393   : > { %1991 = vst [vmem:[%s3682_s13 + $0x70] sm:$0xff] %v1886_v34 }
 0x394   : > { %1992 = vst [vmem:[%s3682_s13 + $0x78] sm:$0xff] %v1951_v17 }
 0x398   : > { %v1888_v8 = vpop.f32.mrf.mxu0  ;;  %v1953_v49 = vpop.f32.mrf.mxu1 }
 0x399   : > { %v1889_v20 = vadd.f32 %v1888_v8, %v3676_v40  ;;  %v1954_v24 = vadd.f32 %v1953_v49, %v3678_v13 }
 0x39b   : > { %1993 = vst [vmem:[%s3682_s13 + $0x80] sm:$0xff] %v1889_v20 }
 0x39c   : > { %1994 = vst [vmem:[%s3682_s13 + $0x88] sm:$0xff] %v1954_v24 }
 0x3a0   : > { %v1891_v56 = vpop.f32.mrf.mxu0  ;;  %v1956_v23 = vpop.f32.mrf.mxu1 }
 0x3a1   : > { %v1892_v2 = vadd.f32 %v1891_v56, %v3676_v40  ;;  %v1957_v60 = vadd.f32 %v1956_v23, %v3678_v13 }
 0x3a3   : > { %1995 = vst [vmem:[%s3682_s13 + $0x90] sm:$0xff] %v1892_v2 }
 0x3a4   : > { %1996 = vst [vmem:[%s3682_s13 + $0x98] sm:$0xff] %v1957_v60 }
 0x3a8   : > { %v1894_v59 = vpop.f32.mrf.mxu0  ;;  %v1959_v29 = vpop.f32.mrf.mxu1 }
 0x3a9   : > { %v1895_v33 = vadd.f32 %v1894_v59, %v3676_v40  ;;  %v1960_v18 = vadd.f32 %v1959_v29, %v3678_v13 }
 0x3ab   : > { %1997 = vst [vmem:[%s3682_s13 + $0xa0] sm:$0xff] %v1895_v33 }
 0x3ac   : > { %1998 = vst [vmem:[%s3682_s13 + $0xa8] sm:$0xff] %v1960_v18 }
 0x3b0   : > { %v1897_v21 = vpop.f32.mrf.mxu0  ;;  %v1962_v12 = vpop.f32.mrf.mxu1 }
 0x3b1   : > { %v1898_v31 = vadd.f32 %v1897_v21, %v3676_v40  ;;  %v1963_v52 = vadd.f32 %v1962_v12, %v3678_v13 }
 0x3b3   : > { %1999 = vst [vmem:[%s3682_s13 + $0xb0] sm:$0xff] %v1898_v31 }
 0x3b4   : > { %2000 = vst [vmem:[%s3682_s13 + $0xb8] sm:$0xff] %v1963_v52 }
 0x3b8   : > { %v1900_v1 = vpop.f32.mrf.mxu0  ;;  %v1965_v5 = vpop.f32.mrf.mxu1 }
 0x3b9   : > { %v1901_v11 = vadd.f32 %v1900_v1, %v3676_v40  ;;  %v1966_v27 = vadd.f32 %v1965_v5, %v3678_v13 }
 0x3bb   : > { %2001 = vst [vmem:[%s3682_s13 + $0xc0] sm:$0xff] %v1901_v11 }
 0x3bc   : > { %2002 = vst [vmem:[%s3682_s13 + $0xc8] sm:$0xff] %v1966_v27 }
 0x3c0   : > { %v1903_v25 = vpop.f32.mrf.mxu0  ;;  %v1968_v19 = vpop.f32.mrf.mxu1 }
 0x3c1   : > { %v1904_v30 = vadd.f32 %v1903_v25, %v3676_v40  ;;  %v1969_v38 = vadd.f32 %v1968_v19, %v3678_v13 }
 0x3c3   : > { %2003 = vst [vmem:[%s3682_s13 + $0xd0] sm:$0xff] %v1904_v30 }
 0x3c4   : > { %2004 = vst [vmem:[%s3682_s13 + $0xd8] sm:$0xff] %v1969_v38 }
 0x3c8   : > { %v1906_v9 = vpop.f32.mrf.mxu0  ;;  %v1971_v37 = vpop.f32.mrf.mxu1 }
 0x3c9   : > { %v1907_v35 = vadd.f32 %v1906_v9, %v3676_v40  ;;  %v1972_v39 = vadd.f32 %v1971_v37, %v3678_v13 }
 0x3cb   : > { %2005 = vst [vmem:[%s3682_s13 + $0xe0] sm:$0xff] %v1907_v35 }
 0x3cc   : > { %2006 = vst [vmem:[%s3682_s13 + $0xe8] sm:$0xff] %v1972_v39 }
 0x3d0   : > { %v1909_v4 = vpop.f32.mrf.mxu0  ;;  %v1974_v51 = vpop.f32.mrf.mxu1 }
 0x3d1   : > { %v1910_v47 = vadd.f32 %v1909_v4, %v3676_v40  ;;  %v1975_v41 = vadd.f32 %v1974_v51, %v3678_v13 }
 0x3d3   : > { %2007 = vst [vmem:[%s3682_s13 + $0xf0] sm:$0xff] %v1910_v47 }
 0x3d4   : > { %2008 = vst [vmem:[%s3682_s13 + $0xf8] sm:$0xff] %v1975_v41 }
 0x3d5   : > { %2423 = shalt.err (!%p2420_p3)
}
 0x3d6   : > { %s2465_s14 = smov 256   ;;  %s2466_s13 = smov 16  }
 0x3d7   : > { %2327 = dma.vmem_to_hbm [thread:$0]  (%p2540_p5), %s2024_s28, 4096, %s2026_s29, %s2010_s25, %s2465_s14, %s2465_s14, %s2466_s13  }
 0x3d8 PF: > { %p2333_p4 = scmp.ge.s32.totalorder %s2458_s24, 2  ;;  %s2040_s18 = sand.u32 1, %s2446_s21  }
 0x3d9   : > { %s2041_s19 = scalar_lea.sflag [#allocation3], %s2040_s18 }
 0x3da   : > { %p2330_p7 = pnand %p2333_p4, %p2544_p6 }
 0x3dc   : > { %p2331_p8 = pneg %p2330_p7 }
 0x3de   : > { %2441 = dma.done.wait (%p2331_p8), %s2041_s19, 4096  }
 0x3df   : > { %2443 = vsyncadd (%p2331_p8), %s2041_s19, 4294963200  ;;  %p16_p9 = scmp.ge.s32.totalorder %s2527_s27, 4   ;;  %s3789_s21 = smov %s2450_s22 }
 0x3e0   : > { %s3790_s22 = smov %s2454_s23  ;;  %s3791_s23 = smov %s2538_s30 }
 0x3e1   : > { %s3792_s24 = smov %s2527_s27  ;;  %18 = sbr.rel (!%p16_p9) target bundleno = 3 (0x3), region = 79 }
 0x3e6   :  { %2047 = vsyncpa [#allocation3], 1 }
 0x3e7   :  { %2049 = vsyncpa [#allocation3 + $0x1], 1 }

</bundles_post_ra>
